<compile_context>
chip_gen: v7x
topology: tpu7x:2x2x1
jax: 0.10.0
libtpu: 0.0.40
codegen_flags: <defaults>
</compile_context>

<pallas_src>
import functools

import jax
import jax.numpy as jnp
from jax import lax
from jax.experimental import pallas as pl
from jax.experimental.pallas import tpu as pltpu


def _round_up(x, m):
    return ((x + m - 1) // m) * m


def _self_attention_kernel(x_ref, w_ref, b_ref, gamma_ref, o_ref, *, C, Qp, use_bf16):
    # x_ref block: (1, C, N) -> one batch element, channel-first.
    mxu_dtype = jnp.bfloat16 if use_bf16 else jnp.float32
    x_mxu = x_ref[0].astype(mxu_dtype)                                      # (C, N)

    # Fused QKV projection: one MXU matmul instead of three 2-lane-wide ones.
    #   w_ref rows = [Wv ; Wq zero-padded to Qp rows ; Wk zero-padded to Qp rows]
    qkv = jnp.dot(w_ref[...].astype(mxu_dtype), x_mxu,
                  preferred_element_type=jnp.float32) + b_ref[...]          # (C+2Qp, N)

    v = qkv[:C]                       # (C,  N)
    q = qkv[C:C + Qp]                 # (Qp, N)  padded channels are exactly 0
    k = qkv[C + Qp:C + 2 * Qp]        # (Qp, N)  padded channels are exactly 0

    # energy[i, j] = sum_c q[c, i] * k[c, j].
    # Only the tiny q tile (Qp = 8 sublanes) needs re-orienting for the MXU; this
    # replaces the full-activation HBM transposes of the old NHWC layout.
    energy = jnp.dot(q.T.astype(mxu_dtype), k.astype(mxu_dtype),
                     preferred_element_type=jnp.float32)                    # (N, N)

    # Softmax over j (torch dim=-1); statistics kept in f32.
    m = jnp.max(energy, axis=-1, keepdims=True)
    p = jnp.exp(energy - m)
    l = jnp.sum(p, axis=-1, keepdims=True)
    # Exact reciprocal keeps the 1e-4 check; pl.reciprocal(..., approx=True) moves
    # this onto the otherwise-idle EUP slot if looser accuracy is acceptable.
    attn = p * pl.reciprocal(l, approx=False)                               # (N, N)

    # out[c, i] = sum_j v[c, j] * attn[i, j]  -- contract-last-of-both is
    # MXU-native (no transpose of either large operand).
    out = lax.dot_general(v.astype(mxu_dtype), attn.astype(mxu_dtype),
                          dimension_numbers=(((1,), (1,)), ((), ())),
                          preferred_element_type=jnp.float32)               # (C, N)

    gamma = gamma_ref[0]                                                    # SMEM scalar
    # Residual re-reads the already-VMEM-resident x block (no long f32 live range).
    o_ref[0] = (gamma * out + x_ref[0].astype(jnp.float32)).astype(o_ref.dtype)


def self_attention_pallas(x_nchw, wq, bq, wk, bk, wv, bv, gamma, *, use_bf16_mxu=False):
    """x_nchw: [B, C, W, H].  Conv weights in torch layout [Cout, Cin, 1, 1]."""
    B, C, W, H = x_nchw.shape
    N = W * H
    Cq = wq.shape[0]
    assert Cq >= 1, "in_dim must be >= 8 so that in_dim // 8 >= 1"
    Qp = _round_up(Cq, 8)             # pad q/k channel count to a sublane multiple
    R = C + 2 * Qp

    # NCHW -> (B, C, N): identical memory layout to torch's .view(B, C, W*H); free.
    x_bcn = x_nchw.reshape(B, C, N)

    # Fused (and q/k zero-padded) projection weight / bias, channel-first (W @ x).
    wq2, wk2, wv2 = wq[:, :, 0, 0], wk[:, :, 0, 0], wv[:, :, 0, 0]
    zw = jnp.zeros((Qp - Cq, C), dtype=wq2.dtype)
    zb = jnp.zeros((Qp - Cq,), dtype=bq.dtype)
    w_fused = jnp.concatenate([wv2, wq2, zw, wk2, zw], axis=0)              # (R, C)
    b_fused = jnp.concatenate([bv, bq, zb, bk, zb], axis=0)[:, None]        # (R, 1)
    b_fused = b_fused.astype(jnp.float32)
    gamma_arr = jnp.reshape(gamma, (1,)).astype(jnp.float32)                # -> SMEM

    kernel = functools.partial(_self_attention_kernel,
                               C=C, Qp=Qp, use_bf16=use_bf16_mxu)

    out_bcn = pl.pallas_call(
        kernel,
        out_shape=jax.ShapeDtypeStruct((B, C, N), x_nchw.dtype),
        grid_spec=pltpu.PrefetchScalarGridSpec(
            num_scalar_prefetch=0,
            # One grid step per batch element; "parallel" lets megacore / v7x's two
            # TensorCores shard over batches.  (For B == 1 on v7x a second parallel
            # query-tile axis would be added; for N >= ~2K switch to a KV-tiled
            # online-softmax so the (N, N) energy never materializes.)
            grid=(B,),
            in_specs=[
                pl.BlockSpec((1, C, N), lambda b: (b, 0, 0)),               # x
                pl.BlockSpec((R, C), lambda b: (0, 0)),                     # fused W (resident)
                pl.BlockSpec((R, 1), lambda b: (0, 0)),                     # fused bias
                pl.BlockSpec(memory_space=pltpu.MemorySpace.SMEM),          # gamma scalar
            ],
            out_specs=pl.BlockSpec((1, C, N), lambda b: (b, 0, 0)),
        ),
        compiler_params=pltpu.CompilerParams(
            dimension_semantics=("parallel",)),
    )(x_bcn, w_fused, b_fused, gamma_arr)

    # (B, C, N) -> NCHW: free reshape, no transpose.
    return out_bcn.reshape(B, C, W, H)


def self_attention_ref(x_nchw, wq, bq, wk, bk, wv, bv, gamma):
    """Plain-JAX reference mirroring the PyTorch forward exactly (NCHW)."""
    B, C, W, H = x_nchw.shape
    N = W * H
    conv1x1 = lambda x, w, b: jnp.einsum('bcwh,oc->bowh', x, w[:, :, 0, 0]) + b[None, :, None, None]
    q = conv1x1(x_nchw, wq, bq).reshape(B, -1, N).transpose(0, 2, 1)   # [B, N, Cq]
    k = conv1x1(x_nchw, wk, bk).reshape(B, -1, N)                      # [B, Cq, N]
    energy = jnp.einsum('bnc,bcm->bnm', q, k)                          # [B, N, N]
    attn = jax.nn.softmax(energy, axis=-1)
    v = conv1x1(x_nchw, wv, bv).reshape(B, -1, N)                      # [B, C, N]
    out = jnp.einsum('bcm,bnm->bcn', v, attn).reshape(B, C, W, H)
    return gamma * out + x_nchw


if __name__ == "__main__":
    # in_dim = 16 -> query/key channels = in_dim // 8 = 2; W = H = 16 -> N = 256
    # tokens, so the kernel's last dim (N) is a multiple of 128: lane-dense
    # loads/stores with no masked vst.
    B, C, W, H = 2, 16, 16, 16
    Cq = C // 8

    key = jax.random.PRNGKey(0)
    ks = jax.random.split(key, 7)
    x = jax.random.normal(ks[0], (B, C, W, H), dtype=jnp.float32)
    wq = jax.random.normal(ks[1], (Cq, C, 1, 1), dtype=jnp.float32) * 0.1
    bq = jax.random.normal(ks[2], (Cq,), dtype=jnp.float32) * 0.1
    wk = jax.random.normal(ks[3], (Cq, C, 1, 1), dtype=jnp.float32) * 0.1
    bk = jax.random.normal(ks[4], (Cq,), dtype=jnp.float32) * 0.1
    wv = jax.random.normal(ks[5], (C, C, 1, 1), dtype=jnp.float32) * 0.1
    bv = jax.random.normal(ks[6], (C,), dtype=jnp.float32) * 0.1

    ok = True
    # gamma = 0.0 matches the nn.Parameter(torch.zeros(1)) init; a nonzero gamma
    # exercises the attention path end-to-end.
    for gamma_val in (0.0, 0.37):
        gamma = jnp.float32(gamma_val)
        ref = self_attention_ref(x, wq, bq, wk, bk, wv, bv, gamma)

        out = jax.block_until_ready(
            self_attention_pallas(x, wq, bq, wk, bk, wv, bv, gamma))
        ok = ok and bool(jnp.allclose(out, ref, atol=1e-4, rtol=1e-4))

        # bf16 MXU-operand fast path (v6e/v7x): f32 accumulation + f32 softmax
        # statistics, so only a small numeric delta vs. the f32 reference.
        out_bf16 = jax.block_until_ready(
            self_attention_pallas(x, wq, bq, wk, bk, wv, bv, gamma,
                                  use_bf16_mxu=True))
        ok = ok and bool(jnp.allclose(out_bf16, ref, atol=5e-2, rtol=5e-2))

    print("KERNEL_OK" if ok else "KERNEL_MISMATCH")
</pallas_src>

<mosaic_0001>
module attributes {stable_mosaic.version = 11 : i64} {
  func.func @_self_attention_kernel(%arg0: i32, %arg1: memref<1x16x256xf32, #tpu.memory_space<vmem>>, %arg2: memref<32x16xf32, #tpu.memory_space<vmem>>, %arg3: memref<32x1xf32, #tpu.memory_space<vmem>>, %arg4: memref<1xf32, #tpu.memory_space<smem>>, %arg5: memref<1x16x256xf32, #tpu.memory_space<vmem>>) attributes {dimension_semantics = [#tpu.dimension_semantics<parallel>], iteration_bounds = array<i64: 2>, scalar_prefetch = 0 : i64, scratch_operands = 0 : i64, tpu.core_type = #tpu.core_type<tc>, window_params = [{transform_indices = @transform_0, window_bounds = array<i64: 1, 16, 256>}, {pipeline_mode = #tpu.pipeline_mode<synchronous>, transform_indices = @transform_1, window_bounds = array<i64: 32, 16>}, {pipeline_mode = #tpu.pipeline_mode<synchronous>, transform_indices = @transform_2, window_bounds = array<i64: 32, 1>}, {transform_indices = @transform_3, window_bounds = array<i64: 1>}, {transform_indices = @transform_4, window_bounds = array<i64: 1, 16, 256>}]} {
    %c0 = arith.constant 0 : index
    %c0_0 = arith.constant 0 : index
    %c0_1 = arith.constant 0 : index
    %0 = vector.load %arg1[%c0, %c0_0, %c0_1] : memref<1x16x256xf32, #tpu.memory_space<vmem>>, vector<1x16x256xf32>
    %1 = vector.shape_cast %0 : vector<1x16x256xf32> to vector<16x256xf32>
    %c0_2 = arith.constant 0 : index
    %c0_3 = arith.constant 0 : index
    %2 = vector.load %arg2[%c0_2, %c0_3] : memref<32x16xf32, #tpu.memory_space<vmem>>, vector<32x16xf32>
    %cst = arith.constant dense<0.000000e+00> : vector<32x256xf32>
    %3 = tpu.matmul %2, %1, %cst {dimension_numbers = #tpu.dot_dimension_numbers<[1], [0], [0], [1], [0, 0, 1, 1], [], []>} : vector<32x16xf32>, vector<16x256xf32>, vector<32x256xf32> -> vector<32x256xf32>
    %c0_4 = arith.constant 0 : index
    %c0_5 = arith.constant 0 : index
    %4 = vector.load %arg3[%c0_4, %c0_5] : memref<32x1xf32, #tpu.memory_space<vmem>>, vector<32x1xf32>
    %5 = vector.broadcast %4 : vector<32x1xf32> to vector<32x256xf32>
    %6 = arith.addf %3, %5 : vector<32x256xf32>
    %7 = vector.extract_strided_slice %6 {offsets = [0, 0], sizes = [16, 256], strides = [1, 1]} : vector<32x256xf32> to vector<16x256xf32>
    %8 = vector.extract_strided_slice %6 {offsets = [16, 0], sizes = [8, 256], strides = [1, 1]} : vector<32x256xf32> to vector<8x256xf32>
    %9 = vector.extract_strided_slice %6 {offsets = [24, 0], sizes = [8, 256], strides = [1, 1]} : vector<32x256xf32> to vector<8x256xf32>
    %10 = tpu.transpose %8, [1, 0] : vector<8x256xf32> -> vector<256x8xf32>
    %cst_6 = arith.constant dense<0.000000e+00> : vector<256x256xf32>
    %11 = tpu.matmul %10, %9, %cst_6 {dimension_numbers = #tpu.dot_dimension_numbers<[1], [0], [0], [1], [0, 0, 1, 1], [], []>} : vector<256x8xf32>, vector<8x256xf32>, vector<256x256xf32> -> vector<256x256xf32>
    %cst_7 = arith.constant dense<0xFF800000> : vector<256xf32>
    %12 = vector.multi_reduction <maximumf>, %11, %cst_7 [1] : vector<256x256xf32> to vector<256xf32>
    %13 = vector.shape_cast %12 : vector<256xf32> to vector<256x1xf32>
    %14 = vector.broadcast %13 : vector<256x1xf32> to vector<256x256xf32>
    %15 = arith.subf %11, %14 : vector<256x256xf32>
    %16 = math.exp %15 : vector<256x256xf32>
    %cst_8 = arith.constant dense<0.000000e+00> : vector<256xf32>
    %17 = vector.multi_reduction <add>, %16, %cst_8 [1] : vector<256x256xf32> to vector<256xf32>
    %18 = vector.shape_cast %17 : vector<256xf32> to vector<256x1xf32>
    %19 = tpu.reciprocal %18 : vector<256x1xf32> -> vector<256x1xf32>
    %20 = vector.broadcast %19 : vector<256x1xf32> to vector<256x256xf32>
    %21 = arith.mulf %16, %20 : vector<256x256xf32>
    %cst_9 = arith.constant dense<0.000000e+00> : vector<16x256xf32>
    %22 = tpu.matmul %7, %21, %cst_9 {dimension_numbers = #tpu.dot_dimension_numbers<[1], [1], [0], [0], [0, 0, 1, 0], [], []>} : vector<16x256xf32>, vector<256x256xf32>, vector<16x256xf32> -> vector<16x256xf32>
    %c0_10 = arith.constant 0 : index
    %23 = memref.load %arg4[%c0_10] : memref<1xf32, #tpu.memory_space<smem>>
    %24 = vector.broadcast %23 : f32 to vector<16x256xf32>
    %25 = arith.mulf %24, %22 : vector<16x256xf32>
    %c0_11 = arith.constant 0 : index
    %c0_12 = arith.constant 0 : index
    %c0_13 = arith.constant 0 : index
    %26 = vector.load %arg1[%c0_11, %c0_12, %c0_13] : memref<1x16x256xf32, #tpu.memory_space<vmem>>, vector<1x16x256xf32>
    %27 = vector.shape_cast %26 : vector<1x16x256xf32> to vector<16x256xf32>
    %28 = arith.addf %25, %27 : vector<16x256xf32>
    %c0_14 = arith.constant 0 : index
    %c0_15 = arith.constant 0 : index
    %c0_16 = arith.constant 0 : index
    %29 = vector.load %arg5[%c0_14, %c0_15, %c0_16] : memref<1x16x256xf32, #tpu.memory_space<vmem>>, vector<1x16x256xf32>
    %30 = vector.shape_cast %29 : vector<1x16x256xf32> to vector<16x256xf32>
    %31 = vector.shape_cast %28 : vector<16x256xf32> to vector<1x16x256xf32>
    tpu.vector_store %arg5[%c0_14, %c0_15, %c0_16], %31 {strides = array<i32>} : memref<1x16x256xf32, #tpu.memory_space<vmem>>, vector<1x16x256xf32>,
    return
  }
  func.func @transform_0(%arg0: i32) -> (i32, i32, i32) {
    %c0_i32 = arith.constant 0 : i32
    %c0_i32_0 = arith.constant 0 : i32
    %c0_i32_1 = arith.constant 0 : i32
    return %arg0, %c0_i32, %c0_i32_0 : i32, i32, i32
  }
  func.func @transform_1(%arg0: i32) -> (i32, i32) {
    %c0_i32 = arith.constant 0 : i32
    %c0_i32_0 = arith.constant 0 : i32
    %c0_i32_1 = arith.constant 0 : i32
    return %c0_i32, %c0_i32_0 : i32, i32
  }
  func.func @transform_2(%arg0: i32) -> (i32, i32) {
    %c0_i32 = arith.constant 0 : i32
    %c0_i32_0 = arith.constant 0 : i32
    %c0_i32_1 = arith.constant 0 : i32
    return %c0_i32, %c0_i32_0 : i32, i32
  }
  func.func @transform_3(%arg0: i32) -> i32 {
    %c0_i32 = arith.constant 0 : i32
    %c0_i32_0 = arith.constant 0 : i32
    return %c0_i32 : i32
  }
  func.func @transform_4(%arg0: i32) -> (i32, i32, i32) {
    %c0_i32 = arith.constant 0 : i32
    %c0_i32_0 = arith.constant 0 : i32
    %c0_i32_1 = arith.constant 0 : i32
    return %arg0, %c0_i32, %c0_i32_0 : i32, i32, i32
  }
}

</mosaic_0001>

<bundles_post_ra>
// kernel: tpu_custom_call.1
= control target key start
LH: loop header
LB: loop body
LE: loop exit
PB: predicated region body
PF: predicated region fallthrough
CT: control target
= control target key end

     0   :  { %s2622_s0 = inlined_call_operand.vmem [shape: f32[2,16,256], index: 0, kind: input, shape index: {}]   ;;  %s2623_s1 = inlined_call_operand.vmem [shape: f32[32,16], index: 1, kind: input, shape index: {}]   ;;  %s2624_s2 = inlined_call_operand.vmem [shape: f32[32,1], index: 2, kind: input, shape index: {}]   ;;  %s2625_s3 = inlined_call_operand.<no memory space> [shape: f32[1], index: 3, kind: input, shape index: {}]   ;;  %s2626_s4 = inlined_call_operand.hbm [shape: f32[2,16,256], index: 4, kind: output, shape index: {}]  }
   0x1   :  { %9 = sst [smem:[#allocation2]] %s2625_s3 }
   0x2   :  { %10 = vsyncpa [#allocation4], 0 }
   0x3   :  { %12 = vsyncpa [#allocation4 + $0x1], 0  ;;  %s1884_s17 = smov 0   ;;  %s1886_s18 = smov 0  }
   0x4   :  { %s1888_s19 = smov 0   ;;  %s1890_s20 = smov 0  }
   0x5 LB: > { %s1905_s3 = sadd.s32 4294967295, %s1849_s20   ;;  %s1396_s21 = sadd.s32 4294967294, %s1849_s20   ;;  %s1849_s20 = sphi %s1890_s20, %s2724_s20   ;;  %s1845_s19 = sphi %s1888_s19, %s2723_s19   ;;  %s1841_s18 = sphi %s1886_s18, %s2722_s18   ;;  %s1837_s17 = sphi %s1884_s17, %s2721_s17  }
   0x6   : > { %s1909_s22 = sadd.s32 1, %s1849_s20   ;;  %s114_s23 = sadd.s32 1, %s1845_s19 }
   0x7   : > { %s111_s24 = ssub.s32 %s1849_s20, %s1909_s22  ;;  %p124_p0 = scmp.ne.s32.totalorder %s1845_s19, %s1841_s18 }
   0x8   : > { %p112_p1 = scmp.eq.s32.totalorder %s111_s24, 0  ;;  %p125_p2 = scmp.eq.s32.totalorder %s1905_s3, 1 }
   0x9   : > { %p130_p3 = scmp.ne.s32.totalorder %s1841_s18, %s1837_s17  ;;  %p131_p4 = scmp.eq.s32.totalorder %s1396_s21, 1 }
   0xa   : > { %s1920_s25 = scalar_select %p112_p1, %s1845_s19, %s114_s23  }
   0xb   : > { %p1922_p5 = por %p125_p2, %p124_p0  ;;  %p1926_p6 = por %p131_p4, %p130_p3 }
   0xc   : > { %p1399_p7 = scmp.ge.s32.totalorder %s1849_s20, 1  ;;  %p166_p8 = scmp.lt.s32.totalorder %s1849_s20, 3 }
   0xe   : > { %p167_p9 = pnand %p1399_p7, %p166_p8 }
  0x10   : > { %170 = sbr.rel (%p167_p9) target bundleno = 1351 (0x547), region = 36 }
  0x17   : > { %p192_p10 = scmp.lt.s32.totalorder %s1905_s3, 1  ;;  %v1851_v0 = vmov 0.0   ;;  %v207_v1 = vld [vmem:[%s2624_s2 + $0x10] sm:$0xff]  ;;  %v1852_v2 = vmov 0   ;;  %v208_v3 = vld [vmem:[%s2624_s2 + $0x18] sm:$0xff]  ;;  %v201_v10 = vld [vmem:[%s2623_s1] sm:$0xff] }
  0x18   : > { %306 = vmatprep.mubr.f32.mxu0 %v1851_v0  ;;  %556 = vmatprep.mubr.f32.mxu1 %v1851_v0  ;;  %vm229_vm0 = vcmask 130048   ;;  %v202_v11 = vld [vmem:[%s2623_s1 + $0x8] sm:$0xff]  ;;  %v203_v12 = vld [vmem:[%s2623_s1 + $0x10] sm:$0xff]  ;;  %v204_v13 = vld [vmem:[%s2623_s1 + $0x18] sm:$0xff]  ;;  %vm395_vm1 = vcmask 64512   ;;  %s189_s6 = sand.u32 1, %s1841_s18  }
  0x19   : > { %s193_s30 = scalar_select %p192_p10, %s1905_s3, 1  ;;  %1589 = vset.pattern.permute.xlu0 %v1852_v2 }
  0x1a   : > { %221 = vperm.xlu0 %1589, %v207_v1   ;;  %s1400_s7 = sshll.u32 %s189_s6, 5  ;;  %s1445_s11 = sshll.u32 %s1905_s3, 9 }
  0x1b   : > { %s1444_s5 = sshll.u32 %s193_s30, 5  ;;  %s191_s8 = scalar_lea.vmem [#allocation3], %s1400_s7 }
  0x1c   : > { %s1945_s10 = scalar_lea.vmem %s2622_s0, %s1444_s5  ;;  %s1306_s5 = sld [smem:[#allocation2]] }
  0x1d   : > { %v198_v4 = vld [vmem:[%s1945_s10 + $0x8] sm:$0xff]  ;;  %v200_v5 = vld [vmem:[%s1945_s10 + $0x18] sm:$0xff]  ;;  %v197_v6 = vld [vmem:[%s1945_s10] sm:$0xff]  ;;  %s1334_s9 = sshll.u32 %s191_s8, 4  ;;  %s2577_s14 = scalar_lea.hbm %s2626_s4, %s1445_s11  ;;  %s2571_s9 = int_to_ptr.vmem [resolvable:$true] %s1334_s9 }
  0x1e   : > { %v1446_v7 = vpack.c.bf16 %v200_v5, %v198_v4  ;;  %v199_v8 = vld [vmem:[%s1945_s10 + $0x10] sm:$0xff]  ;;  %226 = vperm.xlu0 %1589, %v208_v3   ;;  %s2581_s3 = scalar_lea.sflag [#allocation4], %s189_s6  ;;  %s1787_s15 = scalar_lea.vmem %s2571_s9, 512 }
  0x1f   : > { %v1448_v9 = vpack.c.bf16 %v199_v8, %v197_v6  ;;  %p1788_p11 = scmp.ne.s32.totalorder %s2571_s9, %s1787_s15  ;;  %s1853_s16 = smov [#allocation3]  }
  0x20   : > { %1447 = vmatprep.subr.bf16.mxu0 %v1446_v7  ;;  %s1791_s21 = sshll.u32 %s1853_s16, 4  ;;  %s1792_s21 = int_to_ptr.vmem [resolvable:$false] %s1791_s21 }
  0x21   : > { %1449 = vmatpush1.bf16.msra.mxu0 %v1448_v9  ;;  %p1789_p12 = pnand %p1788_p11, %p1922_p5  ;;  %s1793_s23 = scalar_lea.vmem %s1792_s21, 1024 }
  0x22   : > { %p1794_p0 = scmp.lt.s32.totalorder %s2571_s9, %s1792_s21  ;;  %p1795_p1 = scmp.lt.s32.totalorder %s1793_s23, %s1787_s15 }
  0x23   : > { %p1790_p13 = pneg %p1789_p12 }
  0x24   : > { %1403 = vmatmul.mubr.msk.f32.vlgmr.msra.gmra.mrb[0].mxu0 %vm229_vm0, %v201_v10  ;;  %p1796_p2 = por %p1795_p1, %p1794_p0 }
  0x25   : > { %312 = vmatprep.mubr.f32.mxu0 %v1851_v0 }
  0x26   : > { %p1797_p3 = pnand %p1796_p2, %p1790_p13 }
  0x28   : > { %1404 = vmatmul.mubr.msk.f32.gmra.mrb[2].mxu0 %vm229_vm0, %v202_v11 }
  0x29   : > { %318 = vmatprep.mubr.f32.mxu0 %v1851_v0 }
  0x2c   : > { %1405 = vmatmul.mubr.msk.f32.gmra.mrb[4].mxu0 %vm229_vm0, %v203_v12 }
  0x2d   : > { %324 = vmatprep.mubr.f32.mxu0 %v1851_v0 }
  0x30   : > { %1406 = vmatmul.mubr.msk.f32.gmra.mrb[6].mxu0 %vm229_vm0, %v204_v13 }
  0x99   : > { %v222_v18 = vpop.permute.xlu0 %221 }
  0x9d   : > { %v227_v23 = vpop.permute.xlu0 %226 }
  0xf7   : > { %v1966_v14 = vpop.f32.mrb[0].mxu0 }
  0xf8   : > { %2656 = vst [vmem:[#allocation6_spill] sm:$0xff] %v1966_v14  ;;  %v1968_v15 = vpop.f32.mrb[1].mxu0 }
  0xf9   : > { %2657 = vst [vmem:[#allocation7_spill] sm:$0xff] %v1968_v15 }
  0xfb   : > { %v1970_v16 = vpop.f32.mrb[2].mxu0 }
  0xfc   : > { %2658 = vst [vmem:[#allocation8_spill] sm:$0xff] %v1970_v16  ;;  %v1972_v17 = vpop.f32.mrb[3].mxu0 }
  0xfd   : > { %2659 = vst [vmem:[#allocation9_spill] sm:$0xff] %v1972_v17 }
  0xff   : > { %v320_v19 = vpop.f32.mrb[4].mxu0 }
 0x100   : > { %v322_v20 = vpop.f32.mrb[5].mxu0  ;;  %v321_v21 = vadd.f32 %v320_v19, %v222_v18 }
 0x101   : > { %v323_v27 = vadd.f32 %v322_v20, %v222_v18 }
 0x102   : > { %331 = vxpose.xlu1.b32.start.end [1/1] (short) %v321_v21, 128 }
 0x103   : > { %v326_v22 = vpop.f32.mrb[6].mxu0 }
 0x104   : > { %v328_v24 = vpop.f32.mrb[7].mxu0  ;;  %v327_v26 = vadd.f32 %v326_v22, %v227_v23 }
 0x105   : > { %v329_v25 = vadd.f32 %v328_v24, %v227_v23 }
 0x107   : > { %492 = vmatprep.subr.mxu1 %v329_v25 }
 0x108   : > { %493 = vmatpush1.msra.mxu1 %v327_v26 }
 0x13f   : > { %363 = vxpose.xlu1.b32.start.end [1/1] (short) %v323_v27, 128 }
 0x15d   : > { %1590 = vset.pattern.permute.xlu1 %v1852_v2 }
 0x182   : > { %v347_v28 = vpop.trf.xlu1 }
 0x183   : > { %1407 = vmatmul.mubr.msk.f32.vlgmr.msra.gmra.mrb[0].mxu1 %vm395_vm1, %v347_v28 }
 0x184   : > { %562 = vmatprep.mubr.f32.mxu1 %v1851_v0 }
 0x186   : > { %v348_v29 = vpop.trf.xlu1 }
 0x187   : > { %1408 = vmatmul.mubr.msk.f32.gmra.mrb[2].mxu1 %vm395_vm1, %v348_v29 }
 0x188   : > { %568 = vmatprep.mubr.f32.mxu1 %v1851_v0 }
 0x18a   : > { %v349_v30 = vpop.trf.xlu1 }
 0x18b   : > { %1409 = vmatmul.mubr.msk.f32.gmra.mrb[4].mxu1 %vm395_vm1, %v349_v30 }
 0x18c   : > { %574 = vmatprep.mubr.f32.mxu1 %v1851_v0 }
 0x18e   : > { %v350_v31 = vpop.trf.xlu1 }
 0x18f   : > { %1410 = vmatmul.mubr.msk.f32.gmra.mrb[6].mxu1 %vm395_vm1, %v350_v31 }
 0x190   : > { %580 = vmatprep.mubr.f32.mxu1 %v1851_v0 }
 0x192   : > { %v351_v32 = vpop.trf.xlu1 }
 0x193   : > { %1411 = vmatmul.mubr.msk.f32.gmra.mrb[8].mxu1 %vm395_vm1, %v351_v32 }
 0x194   : > { %586 = vmatprep.mubr.f32.mxu1 %v1851_v0 }
 0x196   : > { %v352_v33 = vpop.trf.xlu1 }
 0x197   : > { %1412 = vmatmul.mubr.msk.f32.gmra.mrb[10].mxu1 %vm395_vm1, %v352_v33 }
 0x198   : > { %592 = vmatprep.mubr.f32.mxu1 %v1851_v0 }
 0x19a   : > { %v353_v34 = vpop.trf.xlu1 }
 0x19b   : > { %1413 = vmatmul.mubr.msk.f32.gmra.mrb[12].mxu1 %vm395_vm1, %v353_v34 }
 0x19c   : > { %598 = vmatprep.mubr.f32.mxu1 %v1851_v0 }
 0x19e   : > { %v354_v35 = vpop.trf.xlu1 }
 0x19f   : > { %1414 = vmatmul.mubr.msk.f32.gmra.mrb[14].mxu1 %vm395_vm1, %v354_v35 }
 0x1a0   : > { %604 = vmatprep.mubr.f32.mxu1 %v1851_v0 }
 0x1a2   : > { %v355_v36 = vpop.trf.xlu1 }
 0x1a3   : > { %1415 = vmatmul.mubr.msk.f32.gmra.mrb[16].mxu1 %vm395_vm1, %v355_v36 }
 0x1a4   : > { %610 = vmatprep.mubr.f32.mxu1 %v1851_v0 }
 0x1a6   : > { %v356_v37 = vpop.trf.xlu1 }
 0x1a7   : > { %1416 = vmatmul.mubr.msk.f32.gmra.mrb[18].mxu1 %vm395_vm1, %v356_v37 }
 0x1a8   : > { %616 = vmatprep.mubr.f32.mxu1 %v1851_v0 }
 0x1aa   : > { %v357_v38 = vpop.trf.xlu1 }
 0x1ab   : > { %1417 = vmatmul.mubr.msk.f32.gmra.mrb[20].mxu1 %vm395_vm1, %v357_v38 }
 0x1ac   : > { %622 = vmatprep.mubr.f32.mxu1 %v1851_v0 }
 0x1ae   : > { %v358_v39 = vpop.trf.xlu1 }
 0x1af   : > { %1418 = vmatmul.mubr.msk.f32.gmra.mrb[22].mxu1 %vm395_vm1, %v358_v39 }
 0x1b0   : > { %628 = vmatprep.mubr.f32.mxu1 %v1851_v0 }
 0x1b2   : > { %v359_v40 = vpop.trf.xlu1 }
 0x1b3   : > { %1419 = vmatmul.mubr.msk.f32.gmra.mrb[24].mxu1 %vm395_vm1, %v359_v40 }
 0x1b4   : > { %634 = vmatprep.mubr.f32.mxu1 %v1851_v0 }
 0x1b6   : > { %v360_v41 = vpop.trf.xlu1 }
 0x1b7   : > { %1420 = vmatmul.mubr.msk.f32.gmra.mrb[26].mxu1 %vm395_vm1, %v360_v41 }
 0x1b8   : > { %640 = vmatprep.mubr.f32.mxu1 %v1851_v0 }
 0x1ba   : > { %v361_v42 = vpop.trf.xlu1 }
 0x1bb   : > { %1421 = vmatmul.mubr.msk.f32.gmra.mrb[28].mxu1 %vm395_vm1, %v361_v42 }
 0x1bc   : > { %646 = vmatprep.mubr.f32.mxu1 %v1851_v0 }
 0x1be   : > { %v362_v43 = vpop.trf.xlu1 }
 0x1bf   : > { %1422 = vmatmul.mubr.msk.f32.gmra.mrb[30].mxu1 %vm395_vm1, %v362_v43 }
 0x1c0   : > { %652 = vmatprep.mubr.f32.mxu1 %v1851_v0 }
 0x1c2   : > { %v379_v44 = vpop.trf.xlu1 }
 0x1c3   : > { %1423 = vmatmul.mubr.msk.f32.gmra.mrb[32].mxu1 %vm395_vm1, %v379_v44 }
 0x1c4   : > { %658 = vmatprep.mubr.f32.mxu1 %v1851_v0 }
 0x1c6   : > { %v380_v45 = vpop.trf.xlu1 }
 0x1c7   : > { %1424 = vmatmul.mubr.msk.f32.gmra.mrb[34].mxu1 %vm395_vm1, %v380_v45 }
 0x1c8   : > { %664 = vmatprep.mubr.f32.mxu1 %v1851_v0 }
 0x1ca   : > { %v381_v46 = vpop.trf.xlu1 }
 0x1cb   : > { %1425 = vmatmul.mubr.msk.f32.gmra.mrb[36].mxu1 %vm395_vm1, %v381_v46 }
 0x1cc   : > { %670 = vmatprep.mubr.f32.mxu1 %v1851_v0 }
 0x1ce   : > { %v382_v47 = vpop.trf.xlu1 }
 0x1cf   : > { %1426 = vmatmul.mubr.msk.f32.gmra.mrb[38].mxu1 %vm395_vm1, %v382_v47 }
 0x1d0   : > { %676 = vmatprep.mubr.f32.mxu1 %v1851_v0 }
 0x1d2   : > { %v383_v48 = vpop.trf.xlu1 }
 0x1d3   : > { %1427 = vmatmul.mubr.msk.f32.gmra.mrb[40].mxu1 %vm395_vm1, %v383_v48 }
 0x1d4   : > { %682 = vmatprep.mubr.f32.mxu1 %v1851_v0 }
 0x1d6   : > { %v384_v49 = vpop.trf.xlu1 }
 0x1d7   : > { %1428 = vmatmul.mubr.msk.f32.gmra.mrb[42].mxu1 %vm395_vm1, %v384_v49 }
 0x1d8   : > { %688 = vmatprep.mubr.f32.mxu1 %v1851_v0 }
 0x1da   : > { %v385_v50 = vpop.trf.xlu1 }
 0x1db   : > { %1429 = vmatmul.mubr.msk.f32.gmra.mrb[44].mxu1 %vm395_vm1, %v385_v50 }
 0x1dc   : > { %694 = vmatprep.mubr.f32.mxu1 %v1851_v0 }
 0x1de   : > { %v386_v51 = vpop.trf.xlu1 }
 0x1df   : > { %1430 = vmatmul.mubr.msk.f32.gmra.mrb[46].mxu1 %vm395_vm1, %v386_v51 }
 0x1e0   : > { %700 = vmatprep.mubr.f32.mxu1 %v1851_v0 }
 0x1e2   : > { %v387_v52 = vpop.trf.xlu1 }
 0x1e3   : > { %1431 = vmatmul.mubr.msk.f32.gmra.mrb[48].mxu1 %vm395_vm1, %v387_v52 }
 0x1e4   : > { %706 = vmatprep.mubr.f32.mxu1 %v1851_v0 }
 0x1e6   : > { %v388_v53 = vpop.trf.xlu1 }
 0x1e7   : > { %1432 = vmatmul.mubr.msk.f32.gmra.mrb[50].mxu1 %vm395_vm1, %v388_v53 }
 0x1e8   : > { %712 = vmatprep.mubr.f32.mxu1 %v1851_v0 }
 0x1ea   : > { %v389_v54 = vpop.trf.xlu1 }
 0x1eb   : > { %1433 = vmatmul.mubr.msk.f32.gmra.mrb[52].mxu1 %vm395_vm1, %v389_v54 }
 0x1ec   : > { %718 = vmatprep.mubr.f32.mxu1 %v1851_v0 }
 0x1ee   : > { %v390_v55 = vpop.trf.xlu1 }
 0x1ef   : > { %1434 = vmatmul.mubr.msk.f32.gmra.mrb[54].mxu1 %vm395_vm1, %v390_v55 }
 0x1f0   : > { %724 = vmatprep.mubr.f32.mxu1 %v1851_v0 }
 0x1f2   : > { %v391_v56 = vpop.trf.xlu1 }
 0x1f3   : > { %1435 = vmatmul.mubr.msk.f32.gmra.mrb[56].mxu1 %vm395_vm1, %v391_v56 }
 0x1f4   : > { %730 = vmatprep.mubr.f32.mxu1 %v1851_v0 }
 0x1f6   : > { %v392_v57 = vpop.trf.xlu1 }
 0x1f7   : > { %1436 = vmatmul.mubr.msk.f32.gmra.mrb[58].mxu1 %vm395_vm1, %v392_v57 }
 0x1f8   : > { %736 = vmatprep.mubr.f32.mxu1 %v1851_v0 }
 0x1fa   : > { %v393_v58 = vpop.trf.xlu1 }
 0x1fb   : > { %1437 = vmatmul.mubr.msk.f32.gmra.mrb[60].mxu1 %vm395_vm1, %v393_v58 }
 0x1fc   : > { %742 = vmatprep.mubr.f32.mxu1 %v1851_v0 }
 0x1fe   : > { %v394_v59 = vpop.trf.xlu1 }
 0x1ff   : > { %1438 = vmatmul.mubr.msk.f32.gmra.mrb[62].mxu1 %vm395_vm1, %v394_v59 }
 0x256   : > { %v2037_v60 = vpop.f32.mrb[0].mxu1 }
 0x257   : > { %v2039_v61 = vpop.f32.mrb[1].mxu1 }
 0x258   : > { %v749_v62 = vmax.f32 %v2037_v60, %v2039_v61 }
 0x25a   : > { %750 = vmax.xlane.f32.xlu0 %v749_v62  ;;  %v2043_v63 = vpop.f32.mrb[2].mxu1 }
 0x25b   : > { %v2045_v1 = vpop.f32.mrb[3].mxu1 }
 0x25c   : > { %v752_v2 = vmax.f32 %v2043_v63, %v2045_v1 }
 0x25e   : > { %753 = vmax.xlane.f32.xlu0 %v752_v2  ;;  %v2049_v0 = vpop.f32.mrb[4].mxu1 }
 0x25f   : > { %v2051_v3 = vpop.f32.mrb[5].mxu1 }
 0x260   : > { %v755_v4 = vmax.f32 %v2049_v0, %v2051_v3 }
 0x262   : > { %756 = vmax.xlane.f32.xlu0 %v755_v4  ;;  %v2055_v5 = vpop.f32.mrb[6].mxu1 }
 0x263   : > { %v2057_v6 = vpop.f32.mrb[7].mxu1 }
 0x264   : > { %v758_v7 = vmax.f32 %v2055_v5, %v2057_v6 }
 0x266   : > { %759 = vmax.xlane.f32.xlu0 %v758_v7  ;;  %v2061_v8 = vpop.f32.mrb[8].mxu1 }
 0x267   : > { %v2063_v9 = vpop.f32.mrb[9].mxu1 }
 0x268   : > { %v761_v10 = vmax.f32 %v2061_v8, %v2063_v9 }
 0x26a   : > { %762 = vmax.xlane.f32.xlu0 %v761_v10  ;;  %v2067_v11 = vpop.f32.mrb[10].mxu1 }
 0x26b   : > { %v2069_v12 = vpop.f32.mrb[11].mxu1 }
 0x26c   : > { %v764_v13 = vmax.f32 %v2067_v11, %v2069_v12 }
 0x26e   : > { %765 = vmax.xlane.f32.xlu0 %v764_v13  ;;  %v2073_v18 = vpop.f32.mrb[12].mxu1 }
 0x26f   : > { %v2075_v19 = vpop.f32.mrb[13].mxu1 }
 0x270   : > { %v767_v20 = vmax.f32 %v2073_v18, %v2075_v19 }
 0x272   : > { %768 = vmax.xlane.f32.xlu0 %v767_v20  ;;  %v2079_v21 = vpop.f32.mrb[14].mxu1 }
 0x273   : > { %v2081_v22 = vpop.f32.mrb[15].mxu1 }
 0x274   : > { %v770_v23 = vmax.f32 %v2079_v21, %v2081_v22 }
 0x276   : > { %771 = vmax.xlane.f32.xlu0 %v770_v23  ;;  %v2085_v24 = vpop.f32.mrb[16].mxu1 }
 0x277   : > { %v2087_v25 = vpop.f32.mrb[17].mxu1 }
 0x278   : > { %v773_v26 = vmax.f32 %v2085_v24, %v2087_v25 }
 0x27a   : > { %774 = vmax.xlane.f32.xlu1 %v773_v26  ;;  %v2091_v27 = vpop.f32.mrb[18].mxu1 }
 0x27b   : > { %v2093_v28 = vpop.f32.mrb[19].mxu1 }
 0x27c   : > { %v776_v29 = vmax.f32 %v2091_v27, %v2093_v28 }
 0x27e   : > { %777 = vmax.xlane.f32.xlu0 %v776_v29  ;;  %v2097_v30 = vpop.f32.mrb[20].mxu1 }
 0x27f   : > { %v2099_v31 = vpop.f32.mrb[21].mxu1 }
 0x280   : > { %v779_v32 = vmax.f32 %v2097_v30, %v2099_v31 }
 0x282   : > { %780 = vmax.xlane.f32.xlu0 %v779_v32  ;;  %v2103_v33 = vpop.f32.mrb[22].mxu1 }
 0x283   : > { %v2105_v34 = vpop.f32.mrb[23].mxu1 }
 0x284   : > { %v782_v35 = vmax.f32 %v2103_v33, %v2105_v34 }
 0x286   : > { %783 = vmax.xlane.f32.xlu0 %v782_v35  ;;  %v2109_v36 = vpop.f32.mrb[24].mxu1 }
 0x287   : > { %v2111_v37 = vpop.f32.mrb[25].mxu1 }
 0x288   : > { %v785_v38 = vmax.f32 %v2109_v36, %v2111_v37 }
 0x28a   : > { %786 = vmax.xlane.f32.xlu0 %v785_v38  ;;  %v2115_v39 = vpop.f32.mrb[26].mxu1 }
 0x28b   : > { %v2117_v40 = vpop.f32.mrb[27].mxu1 }
 0x28c   : > { %v788_v41 = vmax.f32 %v2115_v39, %v2117_v40 }
 0x28e   : > { %789 = vmax.xlane.f32.xlu0 %v788_v41  ;;  %v2121_v42 = vpop.f32.mrb[28].mxu1 }
 0x28f   : > { %v2123_v43 = vpop.f32.mrb[29].mxu1 }
 0x290   : > { %v791_v44 = vmax.f32 %v2121_v42, %v2123_v43 }
 0x292   : > { %792 = vmax.xlane.f32.xlu0 %v791_v44  ;;  %v2127_v45 = vpop.f32.mrb[30].mxu1 }
 0x293   : > { %v2129_v46 = vpop.f32.mrb[31].mxu1 }
 0x294   : > { %v794_v47 = vmax.f32 %v2127_v45, %v2129_v46 }
 0x296   : > { %795 = vmax.xlane.f32.xlu0 %v794_v47  ;;  %v2133_v48 = vpop.f32.mrb[32].mxu1 }
 0x297   : > { %v2135_v49 = vpop.f32.mrb[33].mxu1 }
 0x298   : > { %v797_v50 = vmax.f32 %v2133_v48, %v2135_v49 }
 0x29a   : > { %798 = vmax.xlane.f32.xlu0 %v797_v50  ;;  %v2139_v51 = vpop.f32.mrb[34].mxu1 }
 0x29b   : > { %v2141_v52 = vpop.f32.mrb[35].mxu1 }
 0x29c   : > { %v800_v53 = vmax.f32 %v2139_v51, %v2141_v52 }
 0x29e   : > { %801 = vmax.xlane.f32.xlu0 %v800_v53  ;;  %v2145_v54 = vpop.f32.mrb[36].mxu1 }
 0x29f   : > { %v2147_v55 = vpop.f32.mrb[37].mxu1 }
 0x2a0   : > { %v803_v56 = vmax.f32 %v2145_v54, %v2147_v55 }
 0x2a2   : > { %804 = vmax.xlane.f32.xlu0 %v803_v56  ;;  %v2151_v57 = vpop.f32.mrb[38].mxu1 }
 0x2a3   : > { %v2153_v58 = vpop.f32.mrb[39].mxu1 }
 0x2a4   : > { %v806_v59 = vmax.f32 %v2151_v57, %v2153_v58 }
 0x2a6   : > { %807 = vmax.xlane.f32.xlu0 %v806_v59  ;;  %v2157_v62 = vpop.f32.mrb[40].mxu1 }
 0x2a7   : > { %v2159_v2 = vpop.f32.mrb[41].mxu1 }
 0x2a8   : > { %v809_v4 = vmax.f32 %v2157_v62, %v2159_v2 }
 0x2aa   : > { %810 = vmax.xlane.f32.xlu0 %v809_v4  ;;  %v2163_v7 = vpop.f32.mrb[42].mxu1 }
 0x2ab   : > { %v2165_v10 = vpop.f32.mrb[43].mxu1 }
 0x2ac   : > { %v812_v13 = vmax.f32 %v2163_v7, %v2165_v10 }
 0x2ae   : > { %813 = vmax.xlane.f32.xlu0 %v812_v13  ;;  %v2169_v20 = vpop.f32.mrb[44].mxu1 }
 0x2af   : > { %v2171_v23 = vpop.f32.mrb[45].mxu1 }
 0x2b0   : > { %2660 = vst [vmem:[#allocation10_spill] sm:$0xff] %v2171_v23  ;;  %v815_v26 = vmax.f32 %v2169_v20, %v2171_v23 }
 0x2b2   : > { %816 = vmax.xlane.f32.xlu0 %v815_v26  ;;  %v2175_v29 = vpop.f32.mrb[46].mxu1 }
 0x2b3   : > { %2661 = vst [vmem:[#allocation11_spill] sm:$0xff] %v2175_v29  ;;  %v2177_v32 = vpop.f32.mrb[47].mxu1 }
 0x2b4   : > { %2662 = vst [vmem:[#allocation12_spill] sm:$0xff] %v2177_v32  ;;  %v818_v35 = vmax.f32 %v2175_v29, %v2177_v32 }
 0x2b6   : > { %819 = vmax.xlane.f32.xlu0 %v818_v35  ;;  %v2181_v38 = vpop.f32.mrb[48].mxu1 }
 0x2b7   : > { %2663 = vst [vmem:[#allocation13_spill] sm:$0xff] %v2181_v38  ;;  %v2183_v41 = vpop.f32.mrb[49].mxu1 }
 0x2b8   : > { %2664 = vst [vmem:[#allocation14_spill] sm:$0xff] %v2183_v41  ;;  %v821_v44 = vmax.f32 %v2181_v38, %v2183_v41 }
 0x2ba   : > { %822 = vmax.xlane.f32.xlu0 %v821_v44  ;;  %v2187_v47 = vpop.f32.mrb[50].mxu1 }
 0x2bb   : > { %2665 = vst [vmem:[#allocation15_spill] sm:$0xff] %v2187_v47  ;;  %v2189_v50 = vpop.f32.mrb[51].mxu1 }
 0x2bc   : > { %2666 = vst [vmem:[#allocation16_spill] sm:$0xff] %v2189_v50  ;;  %v824_v53 = vmax.f32 %v2187_v47, %v2189_v50 }
 0x2be   : > { %825 = vmax.xlane.f32.xlu0 %v824_v53  ;;  %v2193_v56 = vpop.f32.mrb[52].mxu1 }
 0x2bf   : > { %2667 = vst [vmem:[#allocation17_spill] sm:$0xff] %v2193_v56  ;;  %v2195_v59 = vpop.f32.mrb[53].mxu1 }
 0x2c0   : > { %2668 = vst [vmem:[#allocation18_spill] sm:$0xff] %v2195_v59  ;;  %v827_v4 = vmax.f32 %v2193_v56, %v2195_v59 }
 0x2c2   : > { %828 = vmax.xlane.f32.xlu0 %v827_v4  ;;  %v2199_v13 = vpop.f32.mrb[54].mxu1 }
 0x2c3   : > { %2669 = vst [vmem:[#allocation19_spill] sm:$0xff] %v2199_v13  ;;  %v2201_v26 = vpop.f32.mrb[55].mxu1 }
 0x2c4   : > { %2670 = vst [vmem:[#allocation20_spill] sm:$0xff] %v2201_v26  ;;  %v830_v35 = vmax.f32 %v2199_v13, %v2201_v26 }
 0x2c6   : > { %831 = vmax.xlane.f32.xlu0 %v830_v35  ;;  %v2205_v44 = vpop.f32.mrb[56].mxu1 }
 0x2c7   : > { %2671 = vst [vmem:[#allocation21_spill] sm:$0xff] %v2205_v44  ;;  %v2207_v16 = vpop.f32.mrb[57].mxu1 }
 0x2c8   : > { %2672 = vst [vmem:[#allocation22_spill] sm:$0xff] %v2207_v16  ;;  %v833_v53 = vmax.f32 %v2205_v44, %v2207_v16 }
 0x2ca   : > { %834 = vmax.xlane.f32.xlu1 %v833_v53  ;;  %v2211_v14 = vpop.f32.mrb[58].mxu1 }
 0x2cb   : > { %v2213_v17 = vpop.f32.mrb[59].mxu1 }
 0x2ce   : > { %v2217_v15 = vpop.f32.mrb[60].mxu1 }
 0x2cf   : > { %v2219_v59 = vpop.f32.mrb[61].mxu1 }
 0x2d2   : > { %v2223_v26 = vpop.f32.mrb[62].mxu1 }
 0x2d3   : > { %v2225_v13 = vpop.f32.mrb[63].mxu1 }
 0x2e7   : > { %v751_v16 = vpop.xlane.xlu0 %750 }
 0x2e8   : > { %v845_v44 = vsub.f32 %v2037_v60, %v751_v16  ;;  %v846_v56 = vsub.f32 %v2039_v61, %v751_v16 }
 0x2ea   : > { %v909_v4 = vmul.f32 1.442695, %v845_v44  ;;  %v911_v50 = vmul.f32 1.442695, %v846_v56 }
 0x2eb   : > { %v754_v47 = vpop.xlane.xlu0 %753 }
 0x2ec   : > { %1591 = vpow2.f32 %v909_v4  ;;  %v847_v41 = vsub.f32 %v2043_v63, %v754_v47  ;;  %v848_v35 = vsub.f32 %v2045_v1, %v754_v47 }
 0x2ed   : > { %1593 = vpow2.f32 %v911_v50 }
 0x2ee   : > { %v913_v38 = vmul.f32 1.442695, %v847_v41  ;;  %v915_v32 = vmul.f32 1.442695, %v848_v35 }
 0x2ef   : > { %v757_v29 = vpop.xlane.xlu0 %756 }
 0x2f0   : > { %1595 = vpow2.f32 %v913_v38  ;;  %v849_v53 = vsub.f32 %v2049_v0, %v757_v29  ;;  %v850_v23 = vsub.f32 %v2051_v3, %v757_v29 }
 0x2f1   : > { %1597 = vpow2.f32 %v915_v32 }
 0x2f2   : > { %v917_v60 = vmul.f32 1.442695, %v849_v53  ;;  %v919_v16 = vmul.f32 1.442695, %v850_v23 }
 0x2f3   : > { %v760_v61 = vpop.xlane.xlu0 %759 }
 0x2f4   : > { %1599 = vpow2.f32 %v917_v60  ;;  %v851_v56 = vsub.f32 %v2055_v5, %v760_v61  ;;  %v852_v63 = vsub.f32 %v2057_v6, %v760_v61 }
 0x2f5   : > { %1601 = vpow2.f32 %v919_v16 }
 0x2f6   : > { %v2237_v1 = vpop.eup %1591  ;;  %v921_v41 = vmul.f32 1.442695, %v851_v56  ;;  %v923_v47 = vmul.f32 1.442695, %v852_v63 }
 0x2f7   : > { %v2239_v50 = vpop.eup %1593  ;;  %v763_v38 = vpop.xlane.xlu0 %762 }
 0x2f8   : > { %1603 = vpow2.f32 %v921_v41  ;;  %v853_v0 = vsub.f32 %v2061_v8, %v763_v38  ;;  %v854_v3 = vsub.f32 %v2063_v9, %v763_v38  ;;  %v1037_v23 = vadd.f32 %v2239_v50, %v2237_v1 }
 0x2f9   : > { %1605 = vpow2.f32 %v923_v47 }
 0x2fa   : > { %v2245_v5 = vpop.eup %1595  ;;  %v925_v6 = vmul.f32 1.442695, %v853_v0  ;;  %v927_v29 = vmul.f32 1.442695, %v854_v3  ;;  %1038 = vadd.xlane.f32.xlu0 %v1037_v23 }
 0x2fb   : > { %v2247_v32 = vpop.eup %1597  ;;  %v766_v44 = vpop.xlane.xlu0 %765 }
 0x2fc   : > { %1607 = vpow2.f32 %v925_v6  ;;  %v855_v4 = vsub.f32 %v2067_v11, %v766_v44  ;;  %v856_v35 = vsub.f32 %v2069_v12, %v766_v44  ;;  %v1040_v8 = vadd.f32 %v2247_v32, %v2245_v5 }
 0x2fd   : > { %1609 = vpow2.f32 %v927_v29 }
 0x2fe   : > { %v2253_v9 = vpop.eup %1599  ;;  %v929_v53 = vmul.f32 1.442695, %v855_v4  ;;  %v931_v60 = vmul.f32 1.442695, %v856_v35  ;;  %1041 = vadd.xlane.f32.xlu0 %v1040_v8 }
 0x2ff   : > { %v2255_v16 = vpop.eup %1601  ;;  %v769_v61 = vpop.xlane.xlu0 %768 }
 0x300   : > { %1611 = vpow2.f32 %v929_v53  ;;  %v857_v56 = vsub.f32 %v2073_v18, %v769_v61  ;;  %v858_v63 = vsub.f32 %v2075_v19, %v769_v61  ;;  %v1043_v11 = vadd.f32 %v2255_v16, %v2253_v9 }
 0x301   : > { %1613 = vpow2.f32 %v931_v60 }
 0x302   : > { %v2261_v12 = vpop.eup %1603  ;;  %v933_v41 = vmul.f32 1.442695, %v857_v56  ;;  %v935_v47 = vmul.f32 1.442695, %v858_v63  ;;  %1044 = vadd.xlane.f32.xlu0 %v1043_v11 }
 0x303   : > { %v2263_v38 = vpop.eup %1605  ;;  %v772_v0 = vpop.xlane.xlu0 %771 }
 0x304   : > { %1615 = vpow2.f32 %v933_v41  ;;  %v859_v3 = vsub.f32 %v2079_v21, %v772_v0  ;;  %v860_v23 = vsub.f32 %v2081_v22, %v772_v0  ;;  %v1046_v18 = vadd.f32 %v2263_v38, %v2261_v12 }
 0x305   : > { %1617 = vpow2.f32 %v935_v47 }
 0x306   : > { %v2269_v19 = vpop.eup %1607  ;;  %v937_v6 = vmul.f32 1.442695, %v859_v3  ;;  %v939_v29 = vmul.f32 1.442695, %v860_v23  ;;  %1047 = vadd.xlane.f32.xlu0 %v1046_v18 }
 0x307   : > { %v2271_v44 = vpop.eup %1609  ;;  %v775_v4 = vpop.xlane.xlu1 %774 }
 0x308   : > { %1619 = vpow2.f32 %v937_v6  ;;  %v861_v35 = vsub.f32 %v2085_v24, %v775_v4  ;;  %v862_v8 = vsub.f32 %v2087_v25, %v775_v4  ;;  %v1049_v21 = vadd.f32 %v2271_v44, %v2269_v19 }
 0x309   : > { %1621 = vpow2.f32 %v939_v29  ;;  %v2673_v4 = vmax.f32 %v2211_v14, %v2213_v17 }
 0x30a   : > { %v2277_v22 = vpop.eup %1611  ;;  %v941_v53 = vmul.f32 1.442695, %v861_v35  ;;  %v943_v60 = vmul.f32 1.442695, %v862_v8  ;;  %1050 = vadd.xlane.f32.xlu0 %v1049_v21 }
 0x30b   : > { %v2279_v61 = vpop.eup %1613  ;;  %v778_v56 = vpop.xlane.xlu0 %777 }
 0x30c   : > { %1623 = vpow2.f32 %v941_v53  ;;  %v863_v63 = vsub.f32 %v2091_v27, %v778_v56  ;;  %v864_v11 = vsub.f32 %v2093_v28, %v778_v56  ;;  %v1052_v24 = vadd.f32 %v2279_v61, %v2277_v22 }
 0x30d   : > { %1625 = vpow2.f32 %v943_v60 }
 0x30e   : > { %v2285_v25 = vpop.eup %1615  ;;  %v945_v41 = vmul.f32 1.442695, %v863_v63  ;;  %v947_v47 = vmul.f32 1.442695, %v864_v11  ;;  %1053 = vadd.xlane.f32.xlu0 %v1052_v24  ;;  %v2674_v63 = vmax.f32 %v2217_v15, %v2219_v59 }
 0x30f   : > { %v2287_v0 = vpop.eup %1617  ;;  %v781_v3 = vpop.xlane.xlu0 %780 }
 0x310   : > { %1627 = vpow2.f32 %v945_v41  ;;  %v865_v23 = vsub.f32 %v2097_v30, %v781_v3  ;;  %v866_v18 = vsub.f32 %v2099_v31, %v781_v3  ;;  %v1055_v27 = vadd.f32 %v2287_v0, %v2285_v25 }
 0x311   : > { %1629 = vpow2.f32 %v947_v47 }
 0x312   : > { %v2293_v28 = vpop.eup %1619  ;;  %v949_v6 = vmul.f32 1.442695, %v865_v23  ;;  %v951_v29 = vmul.f32 1.442695, %v866_v18  ;;  %1056 = vadd.xlane.f32.xlu1 %v1055_v27  ;;  %837 = vmax.xlane.f32.xlu0 %v2673_v4  ;;  %v2675_v18 = vmax.f32 %v2223_v26, %v2225_v13 }
 0x313   : > { %v2298_v35 = vpop.eup %1621  ;;  %v784_v8 = vpop.xlane.xlu0 %783 }
 0x314   : > { %1631 = vpow2.f32 %v949_v6  ;;  %v867_v30 = vsub.f32 %v2103_v33, %v784_v8  ;;  %v868_v31 = vsub.f32 %v2105_v34, %v784_v8  ;;  %v1058_v21 = vadd.f32 %v2298_v35, %v2293_v28 }
 0x315   : > { %1633 = vpow2.f32 %v951_v29 }
 0x316   : > { %v2304_v53 = vpop.eup %1623  ;;  %v953_v60 = vmul.f32 1.442695, %v867_v30  ;;  %v955_v56 = vmul.f32 1.442695, %v868_v31  ;;  %1059 = vadd.xlane.f32.xlu0 %v1058_v21  ;;  %840 = vmax.xlane.f32.xlu1 %v2674_v63 }
 0x317   : > { %v2309_v11 = vpop.eup %1625  ;;  %v787_v24 = vpop.xlane.xlu0 %786 }
 0x318   : > { %1635 = vpow2.f32 %v953_v60  ;;  %v869_v33 = vsub.f32 %v2109_v36, %v787_v24  ;;  %v870_v34 = vsub.f32 %v2111_v37, %v787_v24  ;;  %v1061_v41 = vadd.f32 %v2309_v11, %v2304_v53 }
 0x319   : > { %1637 = vpow2.f32 %v955_v56 }
 0x31a   : > { %v2315_v47 = vpop.eup %1627  ;;  %v957_v3 = vmul.f32 1.442695, %v869_v33  ;;  %v959_v23 = vmul.f32 1.442695, %v870_v34  ;;  %843 = vmax.xlane.f32.xlu0 %v2675_v18  ;;  %1062 = vadd.xlane.f32.xlu1 %v1061_v41 }
 0x31b   : > { %v2320_v27 = vpop.eup %1629  ;;  %v790_v6 = vpop.xlane.xlu0 %789 }
 0x31c   : > { %1639 = vpow2.f32 %v957_v3  ;;  %v871_v36 = vsub.f32 %v2115_v39, %v790_v6  ;;  %v872_v37 = vsub.f32 %v2117_v40, %v790_v6  ;;  %v1064_v29 = vadd.f32 %v2320_v27, %v2315_v47 }
 0x31d   : > { %1641 = vpow2.f32 %v959_v23 }
 0x31e   : > { %v2326_v4 = vpop.eup %1631  ;;  %v961_v8 = vmul.f32 1.442695, %v871_v36  ;;  %v963_v30 = vmul.f32 1.442695, %v872_v37  ;;  %1065 = vadd.xlane.f32.xlu0 %v1064_v29 }
 0x31f   : > { %v2328_v31 = vpop.eup %1633  ;;  %v793_v21 = vpop.xlane.xlu0 %792 }
 0x320   : > { %1643 = vpow2.f32 %v961_v8  ;;  %v873_v60 = vsub.f32 %v2121_v42, %v793_v21  ;;  %v874_v56 = vsub.f32 %v2123_v43, %v793_v21  ;;  %v1067_v39 = vadd.f32 %v2328_v31, %v2326_v4 }
 0x321   : > { %1645 = vpow2.f32 %v963_v30 }
 0x322   : > { %v2334_v40 = vpop.eup %1635  ;;  %v965_v63 = vmul.f32 1.442695, %v873_v60  ;;  %v967_v24 = vmul.f32 1.442695, %v874_v56  ;;  %1068 = vadd.xlane.f32.xlu1 %v1067_v39 }
 0x323   : > { %v2336_v33 = vpop.eup %1637  ;;  %v796_v34 = vpop.xlane.xlu0 %795 }
 0x324   : > { %1647 = vpow2.f32 %v965_v63  ;;  %v875_v41 = vsub.f32 %v2127_v45, %v796_v34  ;;  %v876_v3 = vsub.f32 %v2129_v46, %v796_v34  ;;  %v1070_v42 = vadd.f32 %v2336_v33, %v2334_v40 }
 0x325   : > { %1649 = vpow2.f32 %v967_v24 }
 0x326   : > { %v2342_v43 = vpop.eup %1639  ;;  %v969_v23 = vmul.f32 1.442695, %v875_v41  ;;  %v971_v18 = vmul.f32 1.442695, %v876_v3  ;;  %1071 = vadd.xlane.f32.xlu0 %v1070_v42 }
 0x327   : > { %v2344_v6 = vpop.eup %1641  ;;  %v799_v36 = vpop.xlane.xlu0 %798 }
 0x328   : > { %1651 = vpow2.f32 %v969_v23  ;;  %v877_v37 = vsub.f32 %v2133_v48, %v799_v36  ;;  %v878_v29 = vsub.f32 %v2135_v49, %v799_v36  ;;  %v1073_v45 = vadd.f32 %v2344_v6, %v2342_v43 }
 0x329   : > { %1653 = vpow2.f32 %v971_v18 }
 0x32a   : > { %v2350_v46 = vpop.eup %1643  ;;  %v973_v8 = vmul.f32 1.442695, %v877_v37  ;;  %v975_v30 = vmul.f32 1.442695, %v878_v29  ;;  %1074 = vadd.xlane.f32.xlu1 %v1073_v45 }
 0x32b   : > { %v2352_v21 = vpop.eup %1645  ;;  %v802_v60 = vpop.xlane.xlu0 %801 }
 0x32c   : > { %1655 = vpow2.f32 %v973_v8  ;;  %v879_v56 = vsub.f32 %v2139_v51, %v802_v60  ;;  %v880_v39 = vsub.f32 %v2141_v52, %v802_v60  ;;  %v1076_v48 = vadd.f32 %v2352_v21, %v2350_v46 }
 0x32d   : > { %1657 = vpow2.f32 %v975_v30 }
 0x32e   : > { %v2358_v49 = vpop.eup %1647  ;;  %v977_v63 = vmul.f32 1.442695, %v879_v56  ;;  %v979_v24 = vmul.f32 1.442695, %v880_v39  ;;  %1077 = vadd.xlane.f32.xlu0 %v1076_v48 }
 0x32f   : > { %v2360_v34 = vpop.eup %1649  ;;  %v805_v41 = vpop.xlane.xlu0 %804 }
 0x330   : > { %1659 = vpow2.f32 %v977_v63  ;;  %v881_v3 = vsub.f32 %v2145_v54, %v805_v41  ;;  %v882_v42 = vsub.f32 %v2147_v55, %v805_v41  ;;  %v1079_v51 = vadd.f32 %v2360_v34, %v2358_v49 }
 0x331   : > { %1661 = vpow2.f32 %v979_v24 }
 0x332   : > { %v2366_v52 = vpop.eup %1651  ;;  %v981_v23 = vmul.f32 1.442695, %v881_v3  ;;  %v983_v18 = vmul.f32 1.442695, %v882_v42  ;;  %1080 = vadd.xlane.f32.xlu1 %v1079_v51 }
 0x333   : > { %v2368_v36 = vpop.eup %1653  ;;  %v808_v37 = vpop.xlane.xlu0 %807 }
 0x334   : > { %1663 = vpow2.f32 %v981_v23  ;;  %v883_v29 = vsub.f32 %v2151_v57, %v808_v37  ;;  %v884_v45 = vsub.f32 %v2153_v58, %v808_v37  ;;  %v1082_v54 = vadd.f32 %v2368_v36, %v2366_v52 }
 0x335   : > { %1665 = vpow2.f32 %v983_v18 }
 0x336   : > { %v2374_v55 = vpop.eup %1655  ;;  %v985_v8 = vmul.f32 1.442695, %v883_v29  ;;  %v987_v30 = vmul.f32 1.442695, %v884_v45  ;;  %1083 = vadd.xlane.f32.xlu0 %v1082_v54  ;;  %v2676_v54 = vld [vmem:[#allocation10_spill] sm:$0xff] }
 0x337   : > { %v2376_v60 = vpop.eup %1657  ;;  %v811_v56 = vpop.xlane.xlu0 %810 }
 0x338   : > { %1667 = vpow2.f32 %v985_v8  ;;  %v885_v39 = vsub.f32 %v2157_v62, %v811_v56  ;;  %v886_v48 = vsub.f32 %v2159_v2, %v811_v56  ;;  %v1085_v57 = vadd.f32 %v2376_v60, %v2374_v55 }
 0x339   : > { %1669 = vpow2.f32 %v987_v30 }
 0x33a   : > { %v2382_v58 = vpop.eup %1659  ;;  %v989_v63 = vmul.f32 1.442695, %v885_v39  ;;  %v991_v24 = vmul.f32 1.442695, %v886_v48  ;;  %1086 = vadd.xlane.f32.xlu1 %v1085_v57  ;;  %v2677_v57 = vld [vmem:[#allocation11_spill] sm:$0xff] }
 0x33b   : > { %v2384_v41 = vpop.eup %1661  ;;  %v814_v3 = vpop.xlane.xlu0 %813 }
 0x33c   : > { %1671 = vpow2.f32 %v989_v63  ;;  %v887_v42 = vsub.f32 %v2163_v7, %v814_v3  ;;  %v888_v51 = vsub.f32 %v2165_v10, %v814_v3  ;;  %v1088_v62 = vadd.f32 %v2384_v41, %v2382_v58 }
 0x33d   : > { %1673 = vpow2.f32 %v991_v24  ;;  %v2678_v24 = vld [vmem:[#allocation12_spill] sm:$0xff] }
 0x33e   : > { %v2390_v2 = vpop.eup %1663  ;;  %v993_v23 = vmul.f32 1.442695, %v887_v42  ;;  %v995_v18 = vmul.f32 1.442695, %v888_v51  ;;  %1089 = vadd.xlane.f32.xlu0 %v1088_v62 }
 0x33f   : > { %v2392_v37 = vpop.eup %1665  ;;  %v817_v29 = vpop.xlane.xlu0 %816 }
 0x340   : > { %1675 = vpow2.f32 %v993_v23  ;;  %v889_v45 = vsub.f32 %v2169_v20, %v817_v29  ;;  %v890_v8 = vsub.f32 %v2676_v54, %v817_v29  ;;  %v1091_v7 = vadd.f32 %v2392_v37, %v2390_v2  ;;  %v2681_v29 = vld [vmem:[#allocation13_spill] sm:$0xff]  ;;  %v2682_v54 = vld [vmem:[#allocation14_spill] sm:$0xff] }
 0x341   : > { %1677 = vpow2.f32 %v995_v18 }
 0x342   : > { %v2398_v10 = vpop.eup %1667  ;;  %v997_v30 = vmul.f32 1.442695, %v889_v45  ;;  %v999_v56 = vmul.f32 1.442695, %v890_v8  ;;  %1092 = vadd.xlane.f32.xlu1 %v1091_v7 }
 0x343   : > { %v2400_v39 = vpop.eup %1669  ;;  %v820_v48 = vpop.xlane.xlu0 %819 }
 0x344   : > { %1679 = vpow2.f32 %v997_v30  ;;  %v891_v63 = vsub.f32 %v2677_v57, %v820_v48  ;;  %v892_v3 = vsub.f32 %v2678_v24, %v820_v48  ;;  %v1094_v20 = vadd.f32 %v2400_v39, %v2398_v10  ;;  %v2685_v24 = vld [vmem:[#allocation15_spill] sm:$0xff] }
 0x345   : > { %1681 = vpow2.f32 %v999_v56 }
 0x346   : > { %v2406_v42 = vpop.eup %1671  ;;  %v1001_v51 = vmul.f32 1.442695, %v891_v63  ;;  %v1003_v62 = vmul.f32 1.442695, %v892_v3  ;;  %1095 = vadd.xlane.f32.xlu0 %v1094_v20  ;;  %v2686_v20 = vld [vmem:[#allocation16_spill] sm:$0xff] }
 0x347   : > { %2679 = vst [vmem:[#allocation10_spill] sm:$0xff] %v2406_v42  ;;  %v2408_v23 = vpop.eup %1673  ;;  %v823_v18 = vpop.xlane.xlu0 %822 }
 0x348   : > { %2680 = vst [vmem:[#allocation11_spill] sm:$0xff] %v2408_v23  ;;  %1683 = vpow2.f32 %v1001_v51  ;;  %v893_v45 = vsub.f32 %v2681_v29, %v823_v18  ;;  %v894_v8 = vsub.f32 %v2682_v54, %v823_v18  ;;  %v1097_v7 = vadd.f32 %v2408_v23, %v2406_v42 }
 0x349   : > { %1685 = vpow2.f32 %v1003_v62 }
 0x34a   : > { %v2414_v30 = vpop.eup %1675  ;;  %v1005_v56 = vmul.f32 1.442695, %v893_v45  ;;  %v1007_v48 = vmul.f32 1.442695, %v894_v8  ;;  %1098 = vadd.xlane.f32.xlu1 %v1097_v7  ;;  %v2689_v7 = vld [vmem:[#allocation17_spill] sm:$0xff] }
 0x34b   : > { %2683 = vst [vmem:[#allocation12_spill] sm:$0xff] %v2414_v30  ;;  %v2416_v57 = vpop.eup %1677  ;;  %v826_v63 = vpop.xlane.xlu0 %825 }
 0x34c   : > { %2684 = vst [vmem:[#allocation13_spill] sm:$0xff] %v2416_v57  ;;  %1687 = vpow2.f32 %v1005_v56  ;;  %v895_v3 = vsub.f32 %v2685_v24, %v826_v63  ;;  %v896_v51 = vsub.f32 %v2686_v20, %v826_v63  ;;  %v1100_v18 = vadd.f32 %v2416_v57, %v2414_v30  ;;  %v2690_v56 = vld [vmem:[#allocation18_spill] sm:$0xff] }
 0x34d   : > { %1689 = vpow2.f32 %v1007_v48 }
 0x34e   : > { %v2422_v29 = vpop.eup %1679  ;;  %v1009_v62 = vmul.f32 1.442695, %v895_v3  ;;  %v1011_v54 = vmul.f32 1.442695, %v896_v51  ;;  %1101 = vadd.xlane.f32.xlu0 %v1100_v18  ;;  %v2691_v18 = vld [vmem:[#allocation19_spill] sm:$0xff] }
 0x34f   : > { %2687 = vst [vmem:[#allocation14_spill] sm:$0xff] %v2422_v29  ;;  %v2424_v45 = vpop.eup %1681  ;;  %v829_v8 = vpop.xlane.xlu0 %828 }
 0x350   : > { %2688 = vst [vmem:[#allocation15_spill] sm:$0xff] %v2424_v45  ;;  %1691 = vpow2.f32 %v1009_v62  ;;  %v897_v42 = vsub.f32 %v2689_v7, %v829_v8  ;;  %v898_v23 = vsub.f32 %v2690_v56, %v829_v8  ;;  %v1103_v63 = vadd.f32 %v2424_v45, %v2422_v29  ;;  %v2692_v62 = vld [vmem:[#allocation20_spill] sm:$0xff] }
 0x351   : > { %1693 = vpow2.f32 %v1011_v54 }
 0x352   : > { %v2430_v24 = vpop.eup %1683  ;;  %v1013_v48 = vmul.f32 1.442695, %v897_v42  ;;  %v1015_v20 = vmul.f32 1.442695, %v898_v23  ;;  %1104 = vadd.xlane.f32.xlu1 %v1103_v63  ;;  %v2694_v63 = vld [vmem:[#allocation21_spill] sm:$0xff] }
 0x353   : > { %v2432_v3 = vpop.eup %1685  ;;  %v832_v51 = vpop.xlane.xlu0 %831 }
 0x354   : > { %1695 = vpow2.f32 %v1013_v48  ;;  %v899_v30 = vsub.f32 %v2691_v18, %v832_v51  ;;  %v900_v57 = vsub.f32 %v2692_v62, %v832_v51  ;;  %v1106_v8 = vadd.f32 %v2432_v3, %v2430_v24  ;;  %v2695_v48 = vld [vmem:[#allocation22_spill] sm:$0xff] }
 0x355   : > { %1697 = vpow2.f32 %v1015_v20 }
 0x356   : > { %v2438_v7 = vpop.eup %1687  ;;  %v1017_v54 = vmul.f32 1.442695, %v899_v30  ;;  %v1019_v56 = vmul.f32 1.442695, %v900_v57  ;;  %1107 = vadd.xlane.f32.xlu0 %v1106_v8 }
 0x357   : > { %2693 = vst [vmem:[#allocation16_spill] sm:$0xff] %v2438_v7  ;;  %v2440_v42 = vpop.eup %1689  ;;  %v835_v23 = vpop.xlane.xlu1 %834 }
 0x358   : > { %1699 = vpow2.f32 %v1017_v54  ;;  %v901_v29 = vsub.f32 %v2694_v63, %v835_v23  ;;  %v902_v45 = vsub.f32 %v2695_v48, %v835_v23  ;;  %v1109_v51 = vadd.f32 %v2440_v42, %v2438_v7 }
 0x359   : > { %1701 = vpow2.f32 %v1019_v56 }
 0x35a   : > { %v2446_v18 = vpop.eup %1691  ;;  %v1021_v20 = vmul.f32 1.442695, %v901_v29  ;;  %v1023_v62 = vmul.f32 1.442695, %v902_v45  ;;  %1110 = vadd.xlane.f32.xlu1 %v1109_v51 }
 0x35b   : > { %2696 = vst [vmem:[#allocation17_spill] sm:$0xff] %v2446_v18  ;;  %v2448_v30 = vpop.eup %1693 }
 0x35c   : > { %1703 = vpow2.f32 %v1021_v20  ;;  %v1112_v57 = vadd.f32 %v2448_v30, %v2446_v18 }
 0x35d   : > { %1705 = vpow2.f32 %v1023_v62 }
 0x35e   : > { %v2452_v8 = vpop.eup %1695  ;;  %1113 = vadd.xlane.f32.xlu0 %v1112_v57 }
 0x35f   : > { %2697 = vst [vmem:[#allocation18_spill] sm:$0xff] %v2452_v8  ;;  %v2454_v54 = vpop.eup %1697 }
 0x360   : > { %2698 = vst [vmem:[#allocation19_spill] sm:$0xff] %v2454_v54  ;;  %v1115_v56 = vadd.f32 %v2454_v54, %v2452_v8 }
 0x362   : > { %v2458_v23 = vpop.eup %1699  ;;  %1116 = vadd.xlane.f32.xlu1 %v1115_v56 }
 0x363   : > { %2699 = vst [vmem:[#allocation20_spill] sm:$0xff] %v2458_v23  ;;  %v2460_v29 = vpop.eup %1701 }
 0x364   : > { %2700 = vst [vmem:[#allocation21_spill] sm:$0xff] %v2460_v29  ;;  %v1118_v45 = vadd.f32 %v2460_v29, %v2458_v23 }
 0x366   : > { %v2464_v63 = vpop.eup %1703  ;;  %1119 = vadd.xlane.f32.xlu0 %v1118_v45 }
 0x367   : > { %2701 = vst [vmem:[#allocation22_spill] sm:$0xff] %v2464_v63  ;;  %v2466_v48 = vpop.eup %1705 }
 0x368   : > { %2702 = vst [vmem:[#allocation23_spill] sm:$0xff] %v2466_v48  ;;  %v1121_v51 = vadd.f32 %v2466_v48, %v2464_v63 }
 0x36a   : > { %1122 = vadd.xlane.f32.xlu1 %v1121_v51 }
 0x387   : > { %v1039_v20 = vpop.xlane.xlu0 %1038 }
 0x388   : > { %1707 = vrcp.f32 %v1039_v20 }
 0x38b   : > { %v1042_v62 = vpop.xlane.xlu0 %1041 }
 0x38c   : > { %1709 = vrcp.f32 %v1042_v62 }
 0x38f   : > { %v1045_v57 = vpop.xlane.xlu0 %1044 }
 0x390   : > { %1711 = vrcp.f32 %v1045_v57 }
 0x392   : > { %v1708_v8 = vpop.eup %1707 }
 0x393   : > { %v1048_v56 = vpop.xlane.xlu0 %1047  ;;  %v1166_v29 = vmul.f32 %v1708_v8, %v2239_v50  ;;  %v1165_v7 = vmul.f32 %v1708_v8, %v2237_v1 }
 0x394   : > { %1713 = vrcp.f32 %v1048_v56 }
 0x396   : > { %v1710_v54 = vpop.eup %1709 }
 0x397   : > { %v1051_v23 = vpop.xlane.xlu0 %1050  ;;  %v1168_v45 = vmul.f32 %v1710_v54, %v2247_v32  ;;  %v1167_v63 = vmul.f32 %v1710_v54, %v2245_v5 }
 0x398   : > { %1715 = vrcp.f32 %v1051_v23 }
 0x399   : > { %v1450_v51 = vpack.c.bf16 %v1168_v45, %v1166_v29  ;;  %v1452_v48 = vpack.c.bf16 %v1167_v63, %v1165_v7 }
 0x39a   : > { %v1712_v62 = vpop.eup %1711 }
 0x39b   : > { %1451 = vmatprep.subr.bf16.mxu0 %v1450_v51  ;;  %1514 = vmatprep.subr.bf16.mxu1 %v1450_v51  ;;  %v1054_v20 = vpop.xlane.xlu0 %1053  ;;  %v1170_v50 = vmul.f32 %v1712_v62, %v2255_v16  ;;  %v1169_v1 = vmul.f32 %v1712_v62, %v2253_v9 }
 0x39c   : > { %1717 = vrcp.f32 %v1054_v20  ;;  %1453 = vmatpush1.bf16.xpose.msra.mxu0 %v1452_v48  ;;  %1530 = vmatpush1.bf16.xpose.msra.mxu1 %v1452_v48 }
 0x39e   : > { %v1714_v57 = vpop.eup %1713 }
 0x39f   : > { %v838_v56 = vpop.xlane.xlu0 %837  ;;  %v1057_v18 = vpop.xlane.xlu1 %1056  ;;  %v1172_v32 = vmul.f32 %v1714_v57, %v2263_v38  ;;  %v1171_v5 = vmul.f32 %v1714_v57, %v2261_v12 }
 0x3a0   : > { %v903_v7 = vsub.f32 %v2211_v14, %v838_v56  ;;  %v904_v8 = vsub.f32 %v2213_v17, %v838_v56  ;;  %1719 = vrcp.f32 %v1057_v18 }
 0x3a1   : > { %v1454_v54 = vpack.c.bf16 %v1172_v32, %v1170_v50  ;;  %v1456_v23 = vpack.c.bf16 %v1171_v5, %v1169_v1 }
 0x3a2   : > { %v1025_v29 = vmul.f32 1.442695, %v903_v7  ;;  %v1027_v63 = vmul.f32 1.442695, %v904_v8  ;;  %v1716_v16 = vpop.eup %1715 }
 0x3a3   : > { %1455 = vmatprep.subr.bf16.mxu0 %v1454_v54  ;;  %1515 = vmatprep.subr.bf16.mxu1 %v1454_v54  ;;  %v1060_v48 = vpop.xlane.xlu0 %1059  ;;  %v841_v45 = vpop.xlane.xlu1 %840  ;;  %v1174_v18 = vmul.f32 %v1716_v16, %v2271_v44  ;;  %v1173_v62 = vmul.f32 %v1716_v16, %v2269_v19 }
 0x3a4   : > { %1721 = vpow2.f32 %v1025_v29  ;;  %v905_v38 = vsub.f32 %v2217_v15, %v841_v45  ;;  %v906_v9 = vsub.f32 %v2219_v59, %v841_v45  ;;  %1457 = vmatpush1.bf16.xpose.msra.mxu0 %v1456_v23  ;;  %1531 = vmatpush1.bf16.xpose.msra.mxu1 %v1456_v23 }
 0x3a5   : > { %1723 = vpow2.f32 %v1027_v63 }
 0x3a6   : > { %v1718_v14 = vpop.eup %1717  ;;  %1725 = vrcp.f32 %v1060_v48  ;;  %v1029_v17 = vmul.f32 1.442695, %v905_v38  ;;  %v1031_v12 = vmul.f32 1.442695, %v906_v9 }
 0x3a7   : > { %v844_v51 = vpop.xlane.xlu0 %843  ;;  %v1176_v20 = vmul.f32 %v1718_v14, %v2279_v61  ;;  %v1175_v57 = vmul.f32 %v1718_v14, %v2277_v22  ;;  %v1063_v56 = vpop.xlane.xlu1 %1062 }
 0x3a8   : > { %1727 = vpow2.f32 %v1029_v17  ;;  %v907_v15 = vsub.f32 %v2223_v26, %v844_v51  ;;  %v908_v59 = vsub.f32 %v2225_v13, %v844_v51 }
 0x3a9   : > { %1729 = vpow2.f32 %v1031_v12  ;;  %v1458_v50 = vpack.c.bf16 %v1176_v20, %v1174_v18  ;;  %v1460_v32 = vpack.c.bf16 %v1175_v57, %v1173_v62 }
 0x3aa   : > { %v1033_v1 = vmul.f32 1.442695, %v907_v15  ;;  %v1035_v5 = vmul.f32 1.442695, %v908_v59  ;;  %1731 = vrcp.f32 %v1063_v56  ;;  %v1720_v19 = vpop.eup %1719 }
 0x3ab   : > { %1459 = vmatprep.subr.bf16.mxu0 %v1458_v50  ;;  %1516 = vmatprep.subr.bf16.mxu1 %v1458_v50  ;;  %v1066_v44 = vpop.xlane.xlu0 %1065  ;;  %v1178_v8 = vmul.f32 %v1720_v19, %v2287_v0  ;;  %v1177_v23 = vmul.f32 %v1720_v19, %v2285_v25  ;;  %v205_v19 = vld [vmem:[%s2624_s2] sm:$0xff] }
 0x3ac   : > { %1733 = vpow2.f32 %v1033_v1  ;;  %1461 = vmatpush1.bf16.xpose.msra.mxu0 %v1460_v32  ;;  %1532 = vmatpush1.bf16.xpose.msra.mxu1 %v1460_v32 }
 0x3ad   : > { %1735 = vpow2.f32 %v1035_v5 }
 0x3ae   : > { %v2488_v22 = vpop.eup %1721  ;;  %1737 = vrcp.f32 %v1066_v44 }
 0x3af   : > { %v2490_v26 = vpop.eup %1723  ;;  %v1069_v13 = vpop.xlane.xlu1 %1068 }
 0x3b0   : > { %v1726_v61 = vpop.eup %1725  ;;  %v1124_v7 = vadd.f32 %v2490_v26, %v2488_v22  ;;  %1739 = vrcp.f32 %v1069_v13 }
 0x3b1   : > { %v1180_v54 = vmul.f32 %v1726_v61, %v2298_v35  ;;  %v1179_v29 = vmul.f32 %v1726_v61, %v2293_v28 }
 0x3b2   : > { %v2498_v63 = vpop.eup %1727  ;;  %1125 = vadd.xlane.f32.xlu0 %v1124_v7 }
 0x3b3   : > { %v2500_v48 = vpop.eup %1729  ;;  %v1072_v45 = vpop.xlane.xlu0 %1071  ;;  %v1462_v16 = vpack.c.bf16 %v1180_v54, %v1178_v8  ;;  %v1464_v38 = vpack.c.bf16 %v1179_v29, %v1177_v23  ;;  %v206_v29 = vld [vmem:[%s2624_s2 + $0x8] sm:$0xff] }
 0x3b4   : > { %1741 = vrcp.f32 %v1072_v45  ;;  %v1127_v9 = vadd.f32 %v2500_v48, %v2498_v63  ;;  %v1732_v0 = vpop.eup %1731 }
 0x3b5   : > { %1463 = vmatprep.subr.bf16.mxu0 %v1462_v16  ;;  %1517 = vmatprep.subr.bf16.mxu1 %v1462_v16  ;;  %v1182_v12 = vmul.f32 %v1732_v0, %v2309_v11  ;;  %v1181_v18 = vmul.f32 %v1732_v0, %v2304_v53 }
 0x3b6   : > { %v2504_v35 = vpop.eup %1733  ;;  %1465 = vmatpush1.bf16.xpose.msra.mxu0 %v1464_v38  ;;  %1533 = vmatpush1.bf16.xpose.msra.mxu1 %v1464_v38 }
 0x3b7   : > { %v2506_v25 = vpop.eup %1735  ;;  %1128 = vadd.xlane.f32.xlu1 %v1127_v9  ;;  %v1075_v28 = vpop.xlane.xlu1 %1074 }
 0x3b8   : > { %v1738_v14 = vpop.eup %1737  ;;  %v1130_v17 = vadd.f32 %v2506_v25, %v2504_v35  ;;  %1743 = vrcp.f32 %v1075_v28 }
 0x3b9   : > { %v1184_v51 = vmul.f32 %v1738_v14, %v2320_v27  ;;  %v1183_v20 = vmul.f32 %v1738_v14, %v2315_v47 }
 0x3ba   : > { %1131 = vadd.xlane.f32.xlu0 %v1130_v17  ;;  %v1740_v59 = vpop.eup %1739 }
 0x3bb   : > { %v1078_v62 = vpop.xlane.xlu0 %1077  ;;  %v1466_v57 = vpack.c.bf16 %v1184_v51, %v1182_v12  ;;  %v1468_v15 = vpack.c.bf16 %v1183_v20, %v1181_v18  ;;  %v1186_v11 = vmul.f32 %v1740_v59, %v2328_v31  ;;  %v1185_v47 = vmul.f32 %v1740_v59, %v2326_v4 }
 0x3bc   : > { %1745 = vrcp.f32 %v1078_v62 }
 0x3bd   : > { %1467 = vmatprep.subr.bf16.mxu0 %v1466_v57  ;;  %1518 = vmatprep.subr.bf16.mxu1 %v1466_v57 }
 0x3be   : > { %v1742_v56 = vpop.eup %1741  ;;  %1469 = vmatpush1.bf16.xpose.msra.mxu0 %v1468_v15  ;;  %1534 = vmatpush1.bf16.xpose.msra.mxu1 %v1468_v15 }
 0x3bf   : > { %v1081_v50 = vpop.xlane.xlu1 %1080  ;;  %v1188_v27 = vmul.f32 %v1742_v56, %v2336_v33  ;;  %v1187_v53 = vmul.f32 %v1742_v56, %v2334_v40 }
 0x3c0   : > { %1747 = vrcp.f32 %v1081_v50 }
 0x3c1   : > { %v1470_v32 = vpack.c.bf16 %v1188_v27, %v1186_v11  ;;  %v1472_v1 = vpack.c.bf16 %v1187_v53, %v1185_v47  ;;  %v2703_v53 = vld [vmem:[#allocation11_spill] sm:$0xff]  ;;  %v2704_v47 = vld [vmem:[#allocation13_spill] sm:$0xff] }
 0x3c2   : > { %v1744_v44 = vpop.eup %1743 }
 0x3c3   : > { %v1084_v5 = vpop.xlane.xlu0 %1083  ;;  %1471 = vmatprep.subr.bf16.mxu0 %v1470_v32  ;;  %1519 = vmatprep.subr.bf16.mxu1 %v1470_v32  ;;  %v1190_v40 = vmul.f32 %v1744_v44, %v2344_v6  ;;  %v1189_v61 = vmul.f32 %v1744_v44, %v2342_v43  ;;  %v2705_v32 = vld [vmem:[#allocation12_spill] sm:$0xff] }
 0x3c4   : > { %1749 = vrcp.f32 %v1084_v5 }
 0x3c6   : > { %v1746_v13 = vpop.eup %1745  ;;  %1473 = vmatpush1.bf16.xpose.msra.mxu0 %v1472_v1  ;;  %1535 = vmatpush1.bf16.xpose.msra.mxu1 %v1472_v1  ;;  %v2706_v1 = vld [vmem:[#allocation10_spill] sm:$0xff] }
 0x3c7   : > { %v1087_v31 = vpop.xlane.xlu1 %1086  ;;  %v1192_v4 = vmul.f32 %v1746_v13, %v2352_v21  ;;  %v1191_v33 = vmul.f32 %v1746_v13, %v2350_v46 }
 0x3c8   : > { %211 = vperm.xlu1 %1590, %v205_v19   ;;  %1751 = vrcp.f32 %v1087_v31 }
 0x3c9   : > { %v1474_v7 = vpack.c.bf16 %v1192_v4, %v1190_v40  ;;  %v1476_v8 = vpack.c.bf16 %v1191_v33, %v1189_v61  ;;  %v2707_v4 = vld [vmem:[#allocation15_spill] sm:$0xff] }
 0x3ca   : > { %v1748_v23 = vpop.eup %1747 }
 0x3cb   : > { %v1090_v54 = vpop.xlane.xlu0 %1089  ;;  %1475 = vmatprep.subr.bf16.mxu0 %v1474_v7  ;;  %1520 = vmatprep.subr.bf16.mxu1 %v1474_v7  ;;  %v1194_v46 = vmul.f32 %v1748_v23, %v2360_v34  ;;  %v1193_v16 = vmul.f32 %v1748_v23, %v2358_v49 }
 0x3cc   : > { %1753 = vrcp.f32 %v1090_v54 }
 0x3ce   : > { %v1750_v6 = vpop.eup %1749  ;;  %1477 = vmatpush1.bf16.xpose.msra.mxu0 %v1476_v8  ;;  %1536 = vmatpush1.bf16.xpose.msra.mxu1 %v1476_v8  ;;  %v2708_v8 = vld [vmem:[#allocation14_spill] sm:$0xff] }
 0x3cf   : > { %v1093_v21 = vpop.xlane.xlu1 %1092  ;;  %v1196_v43 = vmul.f32 %v1750_v6, %v2368_v36  ;;  %v1195_v45 = vmul.f32 %v1750_v6, %v2366_v52 }
 0x3d0   : > { %216 = vperm.xlu0 %1589, %v206_v29   ;;  %1755 = vrcp.f32 %v1093_v21 }
 0x3d1   : > { %v1478_v38 = vpack.c.bf16 %v1196_v43, %v1194_v46  ;;  %v1480_v9 = vpack.c.bf16 %v1195_v45, %v1193_v16 }
 0x3d2   : > { %v1752_v28 = vpop.eup %1751 }
 0x3d3   : > { %v1096_v0 = vpop.xlane.xlu0 %1095  ;;  %1479 = vmatprep.subr.bf16.mxu0 %v1478_v38  ;;  %1521 = vmatprep.subr.bf16.mxu1 %v1478_v38  ;;  %v1198_v34 = vmul.f32 %v1752_v28, %v2376_v60  ;;  %v1197_v49 = vmul.f32 %v1752_v28, %v2374_v55 }
 0x3d4   : > { %1757 = vrcp.f32 %v1096_v0 }
 0x3d6   : > { %v1754_v14 = vpop.eup %1753  ;;  %1481 = vmatpush1.bf16.xpose.msra.mxu0 %v1480_v9  ;;  %1537 = vmatpush1.bf16.xpose.msra.mxu1 %v1480_v9 }
 0x3d7   : > { %v1099_v17 = vpop.xlane.xlu1 %1098  ;;  %v1200_v36 = vmul.f32 %v1754_v14, %v2384_v41  ;;  %v1199_v52 = vmul.f32 %v1754_v14, %v2382_v58 }
 0x3d8   : > { %1759 = vrcp.f32 %v1099_v17  ;;  %v2711_v17 = vld [vmem:[#allocation19_spill] sm:$0xff] }
 0x3d9   : > { %v1482_v12 = vpack.c.bf16 %v1200_v36, %v1198_v34  ;;  %v1484_v51 = vpack.c.bf16 %v1199_v52, %v1197_v49  ;;  %v2712_v36 = vld [vmem:[#allocation21_spill] sm:$0xff]  ;;  %v2713_v49 = vld [vmem:[#allocation20_spill] sm:$0xff] }
 0x3da   : > { %v1756_v20 = vpop.eup %1755 }
 0x3db   : > { %v1102_v18 = vpop.xlane.xlu0 %1101  ;;  %1483 = vmatprep.subr.bf16.mxu0 %v1482_v12  ;;  %1522 = vmatprep.subr.bf16.mxu1 %v1482_v12  ;;  %v1202_v60 = vmul.f32 %v1756_v20, %v2392_v37  ;;  %v1201_v55 = vmul.f32 %v1756_v20, %v2390_v2  ;;  %v2714_v12 = vld [vmem:[#allocation18_spill] sm:$0xff] }
 0x3dc   : > { %1761 = vrcp.f32 %v1102_v18 }
 0x3de   : > { %v1758_v62 = vpop.eup %1757  ;;  %1485 = vmatpush1.bf16.xpose.msra.mxu0 %v1484_v51  ;;  %1538 = vmatpush1.bf16.xpose.msra.mxu1 %v1484_v51 }
 0x3df   : > { %v1105_v57 = vpop.xlane.xlu1 %1104  ;;  %v1204_v41 = vmul.f32 %v1758_v62, %v2400_v39  ;;  %v1203_v58 = vmul.f32 %v1758_v62, %v2398_v10 }
 0x3e0   : > { %1763 = vrcp.f32 %v1105_v57 }
 0x3e1   : > { %v1486_v15 = vpack.c.bf16 %v1204_v41, %v1202_v60  ;;  %v1488_v59 = vpack.c.bf16 %v1203_v58, %v1201_v55  ;;  %v2715_v55 = vld [vmem:[#allocation7_spill] sm:$0xff] }
 0x3e2   : > { %v1760_v50 = vpop.eup %1759 }
 0x3e3   : > { %v1108_v56 = vpop.xlane.xlu0 %1107  ;;  %1487 = vmatprep.subr.bf16.mxu0 %v1486_v15  ;;  %1523 = vmatprep.subr.bf16.mxu1 %v1486_v15  ;;  %v1206_v37 = vmul.f32 %v1760_v50, %v2703_v53  ;;  %v1205_v2 = vmul.f32 %v1760_v50, %v2706_v1  ;;  %v2718_v1 = vld [vmem:[#allocation9_spill] sm:$0xff] }
 0x3e4   : > { %1765 = vrcp.f32 %v1108_v56  ;;  %v2716_v56 = vld [vmem:[#allocation23_spill] sm:$0xff] }
 0x3e6   : > { %v1762_v11 = vpop.eup %1761  ;;  %1489 = vmatpush1.bf16.xpose.msra.mxu0 %v1488_v59  ;;  %1539 = vmatpush1.bf16.xpose.msra.mxu1 %v1488_v59 }
 0x3e7   : > { %v1111_v27 = vpop.xlane.xlu1 %1110  ;;  %v1208_v39 = vmul.f32 %v1762_v11, %v2704_v47  ;;  %v1207_v10 = vmul.f32 %v1762_v11, %v2705_v32 }
 0x3e8   : > { %1767 = vrcp.f32 %v1111_v27  ;;  %v2717_v27 = vld [vmem:[#allocation22_spill] sm:$0xff] }
 0x3e9   : > { %v1490_v5 = vpack.c.bf16 %v1208_v39, %v1206_v37  ;;  %v1492_v44 = vpack.c.bf16 %v1207_v10, %v1205_v2 }
 0x3ea   : > { %v1764_v13 = vpop.eup %1763 }
 0x3eb   : > { %v1114_v19 = vpop.xlane.xlu0 %1113  ;;  %1491 = vmatprep.subr.bf16.mxu0 %v1490_v5  ;;  %1524 = vmatprep.subr.bf16.mxu1 %v1490_v5  ;;  %v1210_v33 = vmul.f32 %v1764_v13, %v2707_v4  ;;  %v1209_v54 = vmul.f32 %v1764_v13, %v2708_v8 }
 0x3ec   : > { %1769 = vrcp.f32 %v1114_v19 }
 0x3ee   : > { %v1766_v31 = vpop.eup %1765  ;;  %1493 = vmatpush1.bf16.xpose.msra.mxu0 %v1492_v44  ;;  %1540 = vmatpush1.bf16.xpose.msra.mxu1 %v1492_v44 }
 0x3ef   : > { %v1117_v40 = vpop.xlane.xlu1 %1116  ;;  %v1212_v61 = vmul.f32 %v1766_v31, %v2432_v3  ;;  %v1211_v7 = vmul.f32 %v1766_v31, %v2430_v24  ;;  %v2709_v3 = vld [vmem:[#allocation17_spill] sm:$0xff]  ;;  %v2710_v24 = vld [vmem:[#allocation16_spill] sm:$0xff] }
 0x3f0   : > { %1771 = vrcp.f32 %v1117_v40  ;;  %v2719_v40 = vld [vmem:[#allocation6_spill] sm:$0xff] }
 0x3f1   : > { %v1494_v23 = vpack.c.bf16 %v1212_v61, %v1210_v33  ;;  %v1496_v29 = vpack.c.bf16 %v1211_v7, %v1209_v54  ;;  %v2720_v33 = vld [vmem:[#allocation8_spill] sm:$0xff] }
 0x3f2   : > { %v1768_v21 = vpop.eup %1767 }
 0x3f3   : > { %v1120_v6 = vpop.xlane.xlu0 %1119  ;;  %1495 = vmatprep.subr.bf16.mxu0 %v1494_v23  ;;  %1525 = vmatprep.subr.bf16.mxu1 %v1494_v23  ;;  %v1214_v43 = vmul.f32 %v1768_v21, %v2440_v42  ;;  %v1213_v38 = vmul.f32 %v1768_v21, %v2710_v24 }
 0x3f4   : > { %1773 = vrcp.f32 %v1120_v6  ;;  %v1783_v6 = vld [vmem:[%s1945_s10] sm:$0xff] }
 0x3f6   : > { %v1770_v46 = vpop.eup %1769  ;;  %1497 = vmatpush1.bf16.xpose.msra.mxu0 %v1496_v29  ;;  %1541 = vmatpush1.bf16.xpose.msra.mxu1 %v1496_v29 }
 0x3f7   : > { %v1216_v45 = vmul.f32 %v1770_v46, %v2448_v30  ;;  %v1215_v16 = vmul.f32 %v1770_v46, %v2709_v3  ;;  %v1123_v20 = vpop.xlane.xlu1 %1122  ;;  %v1784_v46 = vld [vmem:[%s1945_s10 + $0x10] sm:$0xff] }
 0x3f8   : > { %1775 = vrcp.f32 %v1123_v20 }
 0x3f9   : > { %v1498_v9 = vpack.c.bf16 %v1216_v45, %v1214_v43  ;;  %v1500_v0 = vpack.c.bf16 %v1215_v16, %v1213_v38  ;;  %v1785_v45 = vld [vmem:[%s1945_s10 + $0x8] sm:$0xff]  ;;  %v1786_v16 = vld [vmem:[%s1945_s10 + $0x18] sm:$0xff] }
 0x3fa   : > { %v1772_v28 = vpop.eup %1771 }
 0x3fb   : > { %1499 = vmatprep.subr.bf16.mxu0 %v1498_v9  ;;  %1526 = vmatprep.subr.bf16.mxu1 %v1498_v9  ;;  %v1218_v34 = vmul.f32 %v1772_v28, %v2711_v17  ;;  %v1217_v30 = vmul.f32 %v1772_v28, %v2714_v12 }
 0x3fe   : > { %v1774_v14 = vpop.eup %1773  ;;  %1501 = vmatpush1.bf16.xpose.msra.mxu0 %v1500_v0  ;;  %1542 = vmatpush1.bf16.xpose.msra.mxu1 %v1500_v0 }
 0x3ff   : > { %v1220_v52 = vmul.f32 %v1774_v14, %v2712_v36  ;;  %v1219_v42 = vmul.f32 %v1774_v14, %v2713_v49 }
 0x401   : > { %v1502_v51 = vpack.c.bf16 %v1220_v52, %v1218_v34  ;;  %v1504_v18 = vpack.c.bf16 %v1219_v42, %v1217_v30 }
 0x402   : > { %v1776_v41 = vpop.eup %1775 }
 0x403   : > { %1503 = vmatprep.subr.bf16.mxu0 %v1502_v51  ;;  %1527 = vmatprep.subr.bf16.mxu1 %v1502_v51  ;;  %v1222_v50 = vmul.f32 %v1776_v41, %v2716_v56  ;;  %v1221_v53 = vmul.f32 %v1776_v41, %v2717_v27 }
 0x406   : > { %1505 = vmatpush1.bf16.xpose.msra.mxu0 %v1504_v18  ;;  %1543 = vmatpush1.bf16.xpose.msra.mxu1 %v1504_v18 }
 0x43f   : > { %v1126_v62 = vpop.xlane.xlu0 %1125 }
 0x440   : > { %1777 = vrcp.f32 %v1126_v62 }
 0x444   : > { %v1129_v57 = vpop.xlane.xlu1 %1128 }
 0x445   : > { %1779 = vrcp.f32 %v1129_v57 }
 0x447   : > { %v1132_v60 = vpop.xlane.xlu0 %1131 }
 0x448   : > { %1781 = vrcp.f32 %v1132_v60  ;;  %v212_v58 = vpop.permute.xlu1 %211 }
 0x449   : > { %v311_v15 = vadd.f32 %v2715_v55, %v212_v58  ;;  %v309_v4 = vadd.f32 %v2719_v40, %v212_v58 }
 0x44a   : > { %v1778_v59 = vpop.eup %1777 }
 0x44b   : > { %1293 = vmatprep.mubr.f32.mxu0 %v311_v15  ;;  %v1224_v11 = vmul.f32 %v1778_v59, %v2490_v26  ;;  %v1223_v37 = vmul.f32 %v1778_v59, %v2488_v22 }
 0x44d   : > { %v1506_v47 = vpack.c.bf16 %v1224_v11, %v1222_v50  ;;  %v1508_v39 = vpack.c.bf16 %v1223_v37, %v1221_v53 }
 0x44f   : > { %v217_v32 = vpop.permute.xlu0 %216  ;;  %1507 = vmatprep.subr.bf16.mxu0 %v1506_v47  ;;  %1528 = vmatprep.subr.bf16.mxu1 %v1506_v47  ;;  %v1780_v10 = vpop.eup %1779 }
 0x450   : > { %v317_v2 = vadd.f32 %v2718_v1, %v217_v32  ;;  %1509 = vmatpush1.bf16.xpose.msra.mxu0 %v1508_v39  ;;  %1544 = vmatpush1.bf16.xpose.msra.mxu1 %v1508_v39  ;;  %v1226_v44 = vmul.f32 %v1780_v10, %v2500_v48  ;;  %v1225_v19 = vmul.f32 %v1780_v10, %v2498_v63  ;;  %v1307_v63 = vstv %s1306_s5 }
 0x451   : > { %v315_v61 = vadd.f32 %v2720_v33, %v217_v32 }
 0x452   : > { %v1782_v5 = vpop.eup %1781  ;;  %1299 = vmatprep.mubr.f32.mxu1 %v317_v2 }
 0x453   : > { %v1228_v26 = vmul.f32 %v1782_v5, %v2506_v25  ;;  %v1227_v22 = vmul.f32 %v1782_v5, %v2504_v35 }
 0x455   : > { %v1510_v13 = vpack.c.bf16 %v1228_v26, %v1226_v44  ;;  %v1512_v31 = vpack.c.bf16 %v1227_v22, %v1225_v19 }
 0x457   : > { %1511 = vmatprep.subr.bf16.mxu0 %v1510_v13  ;;  %1529 = vmatprep.subr.bf16.mxu1 %v1510_v13 }
 0x458   : > { %1513 = vmatpush1.bf16.xpose.msra.mxu0 %v1512_v31  ;;  %1545 = vmatpush1.bf16.xpose.msra.mxu1 %v1512_v31 }
 0x45f   : > { %1294 = vmatmul.mubr.f32.vlgmr.msra.gmra.mrb[8].mxu0 %v309_v4  ;;  %1300 = vmatmul.mubr.f32.vlgmr.msra.gmra.mrb[64].mxu1 %v315_v61 }
 0x532   : > { %v1295_v48 = vpop.f32.mrb[8].mxu0  ;;  %v1301_v35 = vpop.f32.mrb[64].mxu1 }
 0x533   : > { %v1308_v25 = vmul.f32 %v1307_v63, %v1295_v48  ;;  %v1310_v7 = vmul.f32 %v1307_v63, %v1301_v35  ;;  %v1297_v8 = vpop.f32.mrb[9].mxu0  ;;  %v1303_v54 = vpop.f32.mrb[65].mxu1 }
 0x534   : > { %v1309_v23 = vmul.f32 %v1307_v63, %v1297_v8  ;;  %v1311_v29 = vmul.f32 %v1307_v63, %v1303_v54 }
 0x535   : > { %v1312_v21 = vadd.f32 %v1783_v6, %v1308_v25  ;;  %v1314_v43 = vadd.f32 %v1784_v46, %v1310_v7 }
 0x536   : > { %v1313_v3 = vadd.f32 %v1785_v45, %v1309_v23  ;;  %v1315_v24 = vadd.f32 %v1786_v16, %v1311_v29 }
 0x537   : > { %1316 = vst [vmem:[%s191_s8] sm:$0xff] %v1312_v21  ;;  %1318 = vst [vmem:[%s191_s8 + $0x10] sm:$0xff] %v1314_v43 }
 0x538   : > { %1317 = vst [vmem:[%s191_s8 + $0x8] sm:$0xff] %v1313_v3  ;;  %1319 = vst [vmem:[%s191_s8 + $0x18] sm:$0xff] %v1315_v24 }
 0x539   : > { %1800 = shalt.err (!%p1797_p3)
}
 0x53a   : > { %s1801_s10 = scalar_lea.hbm %s2577_s14, 512  ;;  %s1805_s29 = scalar_lea.hbm %s2626_s4, 1024 }
 0x53b   : > { %p1802_p4 = scmp.ne.s32.totalorder %s2577_s14, %s1801_s10  ;;  %p1806_p9 = scmp.lt.u32.totalorder %s2577_s14, %s2626_s4 }
 0x53c   : > { %p1807_p10 = scmp.lt.u32.totalorder %s1805_s29, %s1801_s10  ;;  %p1809_p12 = scmp.lt.u32.totalorder %s1801_s10, %s2577_s14 }
 0x53d   : > { %p1803_p7 = pnand %p1802_p4, %p1922_p5 }
 0x53e   : > { %p1808_p11 = por %p1807_p10, %p1806_p9 }
 0x53f   : > { %p1804_p8 = pneg %p1803_p7 }
 0x540   : > { %p1810_p13 = por %p1809_p12, %p1808_p11 }
 0x542   : > { %p1811_p0 = pnand %p1810_p13, %p1804_p8 }
 0x544   : > { %1814 = shalt.err (!%p1811_p0)
}
 0x545   : > { %s1854_s6 = smov 256   ;;  %s1855_s7 = smov 16  }
 0x546   : > { %1546 = dma.vmem_to_hbm [thread:$0]  (%p1922_p5), %s2571_s9, 512, %s2577_s14, %s2581_s3, %s1854_s6, %s1854_s6, %s1855_s7  }
 0x547 PF: > { %p1552_p1 = scmp.ge.s32.totalorder %s1849_s20, 2  ;;  %s1349_s8 = sand.u32 1, %s1837_s17  }
 0x548   : > { %s1350_s11 = scalar_lea.sflag [#allocation4], %s1349_s8 }
 0x549   : > { %p1549_p2 = pnand %p1552_p1, %p1926_p6 }
 0x54b   : > { %1832 = dma.done.wait (!%p1549_p2), %s1350_s11, 512  }
 0x54c   : > { %1834 = vsyncadd (!%p1549_p2), %s1350_s11, 4294966784  ;;  %p15_p3 = scmp.ge.s32.totalorder %s1909_s22, 4   ;;  %s2721_s17 = smov %s1841_s18 }
 0x54d   : > { %s2722_s18 = smov %s1845_s19  ;;  %s2723_s19 = smov %s1920_s25 }
 0x54e   : > { %s2724_s20 = smov %s1909_s22  ;;  %17 = sbr.rel (!%p15_p3) target bundleno = 5 (0x5), region = 71 }
 0x555   :  { %1355 = vsyncpa [#allocation4], 1 }
 0x556   :  { %1357 = vsyncpa [#allocation4 + $0x1], 1 }

</bundles_post_ra>
